<compile_context>
chip_gen: v5e
topology: v5e:2x2
jax: 0.10.0
libtpu: 0.0.40
codegen_flags: <defaults>
</compile_context>

<pallas_src>
import functools
import math

import jax
import jax.numpy as jnp
from jax import lax
from jax.experimental import pallas as pl
from jax.experimental.pallas import tpu as pltpu


def _layer_norm(x, eps=1e-5):
    # F.layer_norm(x, (E,)) with no affine params, fp32.
    mu = jnp.mean(x, axis=-1, keepdims=True)
    xc = x - mu
    var = jnp.mean(xc * xc, axis=-1, keepdims=True)
    return xc * lax.rsqrt(var + eps)


def _gelu_exact(x):
    # nn.GELU() default (approximate='none') -> exact erf formulation.
    # (tanh-approx would shorten the v5e EUP/VPU chain but changes numerics.)
    return 0.5 * x * (1.0 + lax.erf(x * (1.0 / math.sqrt(2.0))))


def transformer_kernel(x_ref, wqkv_ref, bqkv_ref, wo_ref, bo_ref,
                       w1_ref, b1_ref, w2_ref, b2_ref,
                       o_ref, x_acc,
                       *, n_heads, head_dim, seq):
    T, H, D = seq, n_heads, head_dim
    E = H * D
    bf16 = jnp.bfloat16
    f32 = jnp.float32
    l = pl.program_id(1)

    # Layer 0: load this batch tile's activations into the carried VMEM slab.
    @pl.when(l == 0)
    def _():
        x_acc[...] = x_ref[...]

    x = x_acc[...]                                   # (T, E) fp32 residual

    # Causal additive bias (large finite negative; no -inf/NaN footguns).
    row = lax.broadcasted_iota(jnp.int32, (T, T), 0)
    col = lax.broadcasted_iota(jnp.int32, (T, T), 1)
    causal_bias = jnp.where(col <= row, 0.0, -1e30).astype(f32)

    # ----- multi-head causal self-attention on LayerNorm'd input -----
    h = _layer_norm(x).astype(bf16)
    qkv = jnp.dot(h, wqkv_ref[0], preferred_element_type=f32) + bqkv_ref[0]
    # 1/sqrt(D) already folded into wq/bq by the wrapper.
    q = qkv[:, 0 * E:1 * E].reshape(T, H, D)
    k = qkv[:, 1 * E:2 * E].reshape(T, H, D)
    v = qkv[:, 2 * E:3 * E].reshape(T, H, D)

    s = jnp.einsum("qhd,khd->hqk", q.astype(bf16), k.astype(bf16),
                   preferred_element_type=f32)       # (H, T, T)
    s = s + causal_bias                              # broadcast over heads
    s = s - jnp.max(s, axis=-1, keepdims=True)
    p = jnp.exp(s)                                   # masked cols -> exactly 0
    p = p * pl.reciprocal(jnp.sum(p, axis=-1, keepdims=True), approx=True)
    o = jnp.einsum("hqk,khd->qhd", p.astype(bf16), v.astype(bf16),
                   preferred_element_type=f32)       # (T, H, D)
    attn = o.reshape(T, E)                           # == torch.cat over heads
    attn = jnp.dot(attn.astype(bf16), wo_ref[0],
                   preferred_element_type=f32) + bo_ref[0]
    x = x + attn

    # ----- GELU MLP on LayerNorm'd input -----
    h2 = _layer_norm(x).astype(bf16)
    m = jnp.dot(h2, w1_ref[0], preferred_element_type=f32) + b1_ref[0]
    m = _gelu_exact(m)
    m = jnp.dot(m.astype(bf16), w2_ref[0], preferred_element_type=f32) + b2_ref[0]
    x = x + m

    x_acc[...] = x                                   # carry to next layer

    @pl.when(l == pl.num_programs(1) - 1)
    def _():
        o_ref[...] = x


def transformer_forward(x, params, *, n_heads, head_dim):
    """Whole n_layer transformer in one pallas_call with a (B, layer) grid."""
    B, T, E = x.shape
    assert E == n_heads * head_dim
    layers = params["layers"]
    L = len(layers)
    scale = 1.0 / math.sqrt(head_dim)
    bf16 = jnp.bfloat16

    # Pack per-layer weights into a few stacked arrays (layer-major), with the
    # QKV projection fused into a single (E, 3E) weight.  Weights bf16
    # (MXU-native, half the DMA bytes); biases stay fp32.
    wqkv, bqkv, wo, bo, w1, b1, w2, b2 = [], [], [], [], [], [], [], []
    for lp in layers:
        wq_s = lp["wq"] * scale          # fold softmax scale into q proj
        bq_s = lp["bq"] * scale
        wqkv.append(jnp.concatenate([wq_s, lp["wk"], lp["wv"]], axis=1).astype(bf16))
        bqkv.append(jnp.concatenate([bq_s, lp["bk"], lp["bv"]], axis=1))
        wo.append(lp["wo"].astype(bf16)); bo.append(lp["bo"])
        w1.append(lp["w1"].astype(bf16)); b1.append(lp["b1"])
        w2.append(lp["w2"].astype(bf16)); b2.append(lp["b2"])
    wqkv = jnp.stack(wqkv); bqkv = jnp.stack(bqkv)
    wo = jnp.stack(wo); bo = jnp.stack(bo)
    w1 = jnp.stack(w1); b1 = jnp.stack(b1)
    w2 = jnp.stack(w2); b2 = jnp.stack(b2)

    x2 = x.reshape(B * T, E)             # flat lane-dense slab (free in XLA)

    kern = functools.partial(transformer_kernel, n_heads=n_heads,
                             head_dim=head_dim, seq=T)

    out = pl.pallas_call(
        kern,
        out_shape=jax.ShapeDtypeStruct((B * T, E), jnp.float32),
        grid_spec=pltpu.PrefetchScalarGridSpec(
            num_scalar_prefetch=0,
            grid=(B, L),                  # (parallel batch, arbitrary layer)
            in_specs=[
                pl.BlockSpec((T, E), lambda b, l: (b, 0)),            # x
                pl.BlockSpec((1, E, 3 * E), lambda b, l: (l, 0, 0)),  # wqkv
                pl.BlockSpec((1, 1, 3 * E), lambda b, l: (l, 0, 0)),  # bqkv
                pl.BlockSpec((1, E, E), lambda b, l: (l, 0, 0)),      # wo
                pl.BlockSpec((1, 1, E), lambda b, l: (l, 0, 0)),      # bo
                pl.BlockSpec((1, E, 4 * E), lambda b, l: (l, 0, 0)),  # w1
                pl.BlockSpec((1, 1, 4 * E), lambda b, l: (l, 0, 0)),  # b1
                pl.BlockSpec((1, 4 * E, E), lambda b, l: (l, 0, 0)),  # w2
                pl.BlockSpec((1, 1, E), lambda b, l: (l, 0, 0)),      # b2
            ],
            out_specs=pl.BlockSpec((T, E), lambda b, l: (b, 0)),
            scratch_shapes=[pltpu.VMEM((T, E), jnp.float32)],         # carried acts
        ),
        compiler_params=pltpu.CompilerParams(
            dimension_semantics=("parallel", "arbitrary"),
            vmem_limit_bytes=32 * 1024 * 1024,
        ),
    )(x2, wqkv, bqkv, wo, bo, w1, b1, w2, b2)
    return out.reshape(B, T, E)


# --------------------------- parameter building ----------------------------

def _dense(key, fan_in, fan_out):
    # Mirrors nn.Linear init: uniform(-1/sqrt(fan_in), 1/sqrt(fan_in)).
    kw, kb = jax.random.split(key)
    bound = 1.0 / math.sqrt(fan_in)
    w = jax.random.uniform(kw, (fan_in, fan_out), jnp.float32, -bound, bound)
    b = jax.random.uniform(kb, (1, fan_out), jnp.float32, -bound, bound)
    return w, b


def init_params(key, n_layers, n_embd):
    # q/k/v: per-head Linear(E, head_dim) weights stored concatenated over the
    # output dim -> (E, E); y[:, h*D:(h+1)*D] is head h (same fan_in bound).
    layer_keys = jax.random.split(key, n_layers)
    layers = []
    for lk in layer_keys:
        k = jax.random.split(lk, 6)
        wq, bq = _dense(k[0], n_embd, n_embd)
        wk, bk = _dense(k[1], n_embd, n_embd)
        wv, bv = _dense(k[2], n_embd, n_embd)
        wo, bo = _dense(k[3], n_embd, n_embd)
        w1, b1 = _dense(k[4], n_embd, 4 * n_embd)
        w2, b2 = _dense(k[5], 4 * n_embd, n_embd)
        layers.append(dict(wq=wq, bq=bq, wk=wk, bk=bk, wv=wv, bv=bv,
                           wo=wo, bo=bo, w1=w1, b1=b1, w2=w2, b2=b2))
    return dict(layers=layers)


if __name__ == "__main__":
    # TransformerConfig(n_layers=2, n_heads=4, n_embd=32, block_size=32)
    n_layers, n_heads, n_embd, block_size = 2, 4, 32, 32
    head_dim = n_embd // n_heads
    B, T = 2, 8                       # T <= block_size

    key = jax.random.PRNGKey(0)
    k_param, k_x = jax.random.split(key)
    params = init_params(k_param, n_layers, n_embd)
    x = jax.random.normal(k_x, (B, T, n_embd), jnp.float32)

    fwd = jax.jit(functools.partial(transformer_forward,
                                    n_heads=n_heads, head_dim=head_dim))
    y = jax.block_until_ready(fwd(x, params))

    assert y.shape == (B, T, n_embd)
    assert bool(jnp.all(jnp.isfinite(y)))
    print("KERNEL_OK")
</pallas_src>

<mosaic_0001>
module attributes {stable_mosaic.version = 11 : i64} {
  func.func @transformer_kernel(%arg0: i32, %arg1: i32, %arg2: memref<8x32xf32, #tpu.memory_space<vmem>>, %arg3: memref<1x32x96xbf16, #tpu.memory_space<vmem>>, %arg4: memref<1x1x96xf32, #tpu.memory_space<vmem>>, %arg5: memref<1x32x32xbf16, #tpu.memory_space<vmem>>, %arg6: memref<1x1x32xf32, #tpu.memory_space<vmem>>, %arg7: memref<1x32x128xbf16, #tpu.memory_space<vmem>>, %arg8: memref<1x1x128xf32, #tpu.memory_space<vmem>>, %arg9: memref<1x128x32xbf16, #tpu.memory_space<vmem>>, %arg10: memref<1x1x32xf32, #tpu.memory_space<vmem>>, %arg11: memref<8x32xf32, #tpu.memory_space<vmem>>, %arg12: memref<8x32xf32, #tpu.memory_space<vmem>>) attributes {dimension_semantics = [#tpu.dimension_semantics<parallel>, #tpu.dimension_semantics<arbitrary>], iteration_bounds = array<i64: 2, 2>, scalar_prefetch = 0 : i64, scratch_operands = 1 : i64, tpu.core_type = #tpu.core_type<tc>, window_params = [{transform_indices = @transform_0, window_bounds = array<i64: 8, 32>}, {transform_indices = @transform_1, window_bounds = array<i64: 1, 32, 96>}, {transform_indices = @transform_2, window_bounds = array<i64: 1, 1, 96>}, {transform_indices = @transform_3, window_bounds = array<i64: 1, 32, 32>}, {transform_indices = @transform_4, window_bounds = array<i64: 1, 1, 32>}, {transform_indices = @transform_5, window_bounds = array<i64: 1, 32, 128>}, {transform_indices = @transform_6, window_bounds = array<i64: 1, 1, 128>}, {transform_indices = @transform_7, window_bounds = array<i64: 1, 128, 32>}, {transform_indices = @transform_8, window_bounds = array<i64: 1, 1, 32>}, {transform_indices = @transform_9, window_bounds = array<i64: 8, 32>}]} {
    %c0_i32 = arith.constant 0 : i32
    %0 = arith.cmpi eq, %arg1, %c0_i32 : i32
    %1 = arith.extui %0 : i1 to i32
    %c0_i32_0 = arith.constant 0 : i32
    %2 = arith.cmpi ne, %1, %c0_i32_0 : i32
    scf.if %2 {
      %c0_51 = arith.constant 0 : index
      %c0_52 = arith.constant 0 : index
      %115 = vector.load %arg2[%c0_51, %c0_52] : memref<8x32xf32, #tpu.memory_space<vmem>>, vector<8x32xf32>
      %c0_53 = arith.constant 0 : index
      %c0_54 = arith.constant 0 : index
      %116 = vector.load %arg12[%c0_53, %c0_54] : memref<8x32xf32, #tpu.memory_space<vmem>>, vector<8x32xf32>
      tpu.vector_store %arg12[%c0_53, %c0_54], %115 {strides = array<i32>} : memref<8x32xf32, #tpu.memory_space<vmem>>, vector<8x32xf32>,
    } else {
    }
    %c0 = arith.constant 0 : index
    %c0_1 = arith.constant 0 : index
    %3 = vector.load %arg12[%c0, %c0_1] : memref<8x32xf32, #tpu.memory_space<vmem>>, vector<8x32xf32>
    %4 = tpu.iota {dimensions = array<i32: 0>} : vector<8x8xi32>
    %5 = tpu.iota {dimensions = array<i32: 1>} : vector<8x8xi32>
    %6 = arith.cmpi sle, %5, %4 : vector<8x8xi32>
    %cst = arith.constant 0.000000e+00 : f32
    %cst_2 = arith.constant -1.000000e+30 : f32
    %7 = vector.broadcast %cst : f32 to vector<8x8xf32>
    %8 = vector.broadcast %cst_2 : f32 to vector<8x8xf32>
    %9 = arith.select %6, %7, %8 : vector<8x8xi1>, vector<8x8xf32>
    %cst_3 = arith.constant dense<0.000000e+00> : vector<8xf32>
    %10 = vector.multi_reduction <add>, %3, %cst_3 [1] : vector<8x32xf32> to vector<8xf32>
    %11 = vector.shape_cast %10 : vector<8xf32> to vector<8x1xf32>
    %cst_4 = arith.constant 3.200000e+01 : f32
    %12 = vector.broadcast %cst_4 : f32 to vector<8x1xf32>
    %13 = arith.divf %11, %12 : vector<8x1xf32>
    %14 = vector.broadcast %13 : vector<8x1xf32> to vector<8x32xf32>
    %15 = arith.subf %3, %14 : vector<8x32xf32>
    %16 = arith.mulf %15, %15 : vector<8x32xf32>
    %cst_5 = arith.constant dense<0.000000e+00> : vector<8xf32>
    %17 = vector.multi_reduction <add>, %16, %cst_5 [1] : vector<8x32xf32> to vector<8xf32>
    %18 = vector.shape_cast %17 : vector<8xf32> to vector<8x1xf32>
    %cst_6 = arith.constant 3.200000e+01 : f32
    %19 = vector.broadcast %cst_6 : f32 to vector<8x1xf32>
    %20 = arith.divf %18, %19 : vector<8x1xf32>
    %cst_7 = arith.constant 9.99999974E-6 : f32
    %21 = vector.broadcast %cst_7 : f32 to vector<8x1xf32>
    %22 = arith.addf %20, %21 : vector<8x1xf32>
    %23 = math.rsqrt %22 : vector<8x1xf32>
    %24 = vector.broadcast %23 : vector<8x1xf32> to vector<8x32xf32>
    %25 = arith.mulf %15, %24 : vector<8x32xf32>
    %26 = arith.truncf %25 : vector<8x32xf32> to vector<8x32xbf16>
    %c0_8 = arith.constant 0 : index
    %c0_9 = arith.constant 0 : index
    %c0_10 = arith.constant 0 : index
    %27 = vector.load %arg3[%c0_8, %c0_9, %c0_10] : memref<1x32x96xbf16, #tpu.memory_space<vmem>>, vector<1x32x96xbf16>
    %28 = vector.shape_cast %27 : vector<1x32x96xbf16> to vector<32x96xbf16>
    %cst_11 = arith.constant dense<0.000000e+00> : vector<8x96xf32>
    %29 = tpu.matmul %26, %28, %cst_11 {dimension_numbers = #tpu.dot_dimension_numbers<[1], [0], [0], [1], [0, 0, 1, 1], [], []>} : vector<8x32xbf16>, vector<32x96xbf16>, vector<8x96xf32> -> vector<8x96xf32>
    %c0_12 = arith.constant 0 : index
    %c0_13 = arith.constant 0 : index
    %c0_14 = arith.constant 0 : index
    %30 = vector.load %arg4[%c0_12, %c0_13, %c0_14] : memref<1x1x96xf32, #tpu.memory_space<vmem>>, vector<1x1x96xf32>
    %31 = vector.shape_cast %30 : vector<1x1x96xf32> to vector<1x96xf32>
    %32 = vector.broadcast %31 : vector<1x96xf32> to vector<8x96xf32>
    %33 = arith.addf %29, %32 : vector<8x96xf32>
    %34 = vector.extract_strided_slice %33 {offsets = [0, 0], sizes = [8, 32], strides = [1, 1]} : vector<8x96xf32> to vector<8x32xf32>
    %35 = vector.shape_cast %34 : vector<8x32xf32> to vector<8x4x8xf32>
    %36 = vector.extract_strided_slice %33 {offsets = [0, 32], sizes = [8, 32], strides = [1, 1]} : vector<8x96xf32> to vector<8x32xf32>
    %37 = vector.shape_cast %36 : vector<8x32xf32> to vector<8x4x8xf32>
    %38 = vector.extract_strided_slice %33 {offsets = [0, 64], sizes = [8, 32], strides = [1, 1]} : vector<8x96xf32> to vector<8x32xf32>
    %39 = vector.shape_cast %38 : vector<8x32xf32> to vector<8x4x8xf32>
    %40 = arith.truncf %35 : vector<8x4x8xf32> to vector<8x4x8xbf16>
    %41 = arith.truncf %37 : vector<8x4x8xf32> to vector<8x4x8xbf16>
    "tpu.trace_start"() <{level = 10 : i32, message = "qhd,khd->hqk"}> : () -> ()
    %cst_15 = arith.constant dense<0.000000e+00> : vector<4x8x8xf32>
    %42 = tpu.matmul %40, %41, %cst_15 {dimension_numbers = #tpu.dot_dimension_numbers<[2], [2], [0], [0], [0, 1, 0, 0, 1, 0], [1], [1]>} : vector<8x4x8xbf16>, vector<8x4x8xbf16>, vector<4x8x8xf32> -> vector<4x8x8xf32>
    "tpu.trace_stop"() : () -> ()
    %43 = vector.shape_cast %9 : vector<8x8xf32> to vector<1x8x8xf32>
    %44 = vector.broadcast %43 : vector<1x8x8xf32> to vector<4x8x8xf32>
    %45 = arith.addf %42, %44 : vector<4x8x8xf32>
    %cst_16 = arith.constant dense<0xFF800000> : vector<4x8xf32>
    %46 = vector.multi_reduction <maximumf>, %45, %cst_16 [2] : vector<4x8x8xf32> to vector<4x8xf32>
    %47 = vector.shape_cast %46 : vector<4x8xf32> to vector<4x8x1xf32>
    %48 = vector.broadcast %47 : vector<4x8x1xf32> to vector<4x8x8xf32>
    %49 = arith.subf %45, %48 : vector<4x8x8xf32>
    %50 = math.exp %49 : vector<4x8x8xf32>
    %cst_17 = arith.constant dense<0.000000e+00> : vector<4x8xf32>
    %51 = vector.multi_reduction <add>, %50, %cst_17 [2] : vector<4x8x8xf32> to vector<4x8xf32>
    %52 = vector.shape_cast %51 : vector<4x8xf32> to vector<4x8x1xf32>
    %53 = tpu.reciprocal %52 {approx = true} : vector<4x8x1xf32> -> vector<4x8x1xf32>
    %54 = vector.broadcast %53 : vector<4x8x1xf32> to vector<4x8x8xf32>
    %55 = arith.mulf %50, %54 : vector<4x8x8xf32>
    %56 = arith.truncf %55 : vector<4x8x8xf32> to vector<4x8x8xbf16>
    %57 = arith.truncf %39 : vector<8x4x8xf32> to vector<8x4x8xbf16>
    "tpu.trace_start"() <{level = 10 : i32, message = "hqk,khd->qhd"}> : () -> ()
    %cst_18 = arith.constant dense<0.000000e+00> : vector<4x8x8xf32>
    %58 = tpu.matmul %57, %56, %cst_18 {dimension_numbers = #tpu.dot_dimension_numbers<[0], [2], [2], [1], [0, 1, 0, 2, 1, 1], [1], [0]>} : vector<8x4x8xbf16>, vector<4x8x8xbf16>, vector<4x8x8xf32> -> vector<4x8x8xf32>
    %59 = tpu.transpose %58, [2, 0, 1] : vector<4x8x8xf32> -> vector<8x4x8xf32>
    "tpu.trace_stop"() : () -> ()
    %60 = vector.shape_cast %59 : vector<8x4x8xf32> to vector<8x32xf32>
    %61 = arith.truncf %60 : vector<8x32xf32> to vector<8x32xbf16>
    %c0_19 = arith.constant 0 : index
    %c0_20 = arith.constant 0 : index
    %c0_21 = arith.constant 0 : index
    %62 = vector.load %arg5[%c0_19, %c0_20, %c0_21] : memref<1x32x32xbf16, #tpu.memory_space<vmem>>, vector<1x32x32xbf16>
    %63 = vector.shape_cast %62 : vector<1x32x32xbf16> to vector<32x32xbf16>
    %cst_22 = arith.constant dense<0.000000e+00> : vector<8x32xf32>
    %64 = tpu.matmul %61, %63, %cst_22 {dimension_numbers = #tpu.dot_dimension_numbers<[1], [0], [0], [1], [0, 0, 1, 1], [], []>} : vector<8x32xbf16>, vector<32x32xbf16>, vector<8x32xf32> -> vector<8x32xf32>
    %c0_23 = arith.constant 0 : index
    %c0_24 = arith.constant 0 : index
    %c0_25 = arith.constant 0 : index
    %65 = vector.load %arg6[%c0_23, %c0_24, %c0_25] : memref<1x1x32xf32, #tpu.memory_space<vmem>>, vector<1x1x32xf32>
    %66 = vector.shape_cast %65 : vector<1x1x32xf32> to vector<1x32xf32>
    %67 = vector.broadcast %66 : vector<1x32xf32> to vector<8x32xf32>
    %68 = arith.addf %64, %67 : vector<8x32xf32>
    %69 = arith.addf %3, %68 : vector<8x32xf32>
    %cst_26 = arith.constant dense<0.000000e+00> : vector<8xf32>
    %70 = vector.multi_reduction <add>, %69, %cst_26 [1] : vector<8x32xf32> to vector<8xf32>
    %71 = vector.shape_cast %70 : vector<8xf32> to vector<8x1xf32>
    %cst_27 = arith.constant 3.200000e+01 : f32
    %72 = vector.broadcast %cst_27 : f32 to vector<8x1xf32>
    %73 = arith.divf %71, %72 : vector<8x1xf32>
    %74 = vector.broadcast %73 : vector<8x1xf32> to vector<8x32xf32>
    %75 = arith.subf %69, %74 : vector<8x32xf32>
    %76 = arith.mulf %75, %75 : vector<8x32xf32>
    %cst_28 = arith.constant dense<0.000000e+00> : vector<8xf32>
    %77 = vector.multi_reduction <add>, %76, %cst_28 [1] : vector<8x32xf32> to vector<8xf32>
    %78 = vector.shape_cast %77 : vector<8xf32> to vector<8x1xf32>
    %cst_29 = arith.constant 3.200000e+01 : f32
    %79 = vector.broadcast %cst_29 : f32 to vector<8x1xf32>
    %80 = arith.divf %78, %79 : vector<8x1xf32>
    %cst_30 = arith.constant 9.99999974E-6 : f32
    %81 = vector.broadcast %cst_30 : f32 to vector<8x1xf32>
    %82 = arith.addf %80, %81 : vector<8x1xf32>
    %83 = math.rsqrt %82 : vector<8x1xf32>
    %84 = vector.broadcast %83 : vector<8x1xf32> to vector<8x32xf32>
    %85 = arith.mulf %75, %84 : vector<8x32xf32>
    %86 = arith.truncf %85 : vector<8x32xf32> to vector<8x32xbf16>
    %c0_31 = arith.constant 0 : index
    %c0_32 = arith.constant 0 : index
    %c0_33 = arith.constant 0 : index
    %87 = vector.load %arg7[%c0_31, %c0_32, %c0_33] : memref<1x32x128xbf16, #tpu.memory_space<vmem>>, vector<1x32x128xbf16>
    %88 = vector.shape_cast %87 : vector<1x32x128xbf16> to vector<32x128xbf16>
    %cst_34 = arith.constant dense<0.000000e+00> : vector<8x128xf32>
    %89 = tpu.matmul %86, %88, %cst_34 {dimension_numbers = #tpu.dot_dimension_numbers<[1], [0], [0], [1], [0, 0, 1, 1], [], []>} : vector<8x32xbf16>, vector<32x128xbf16>, vector<8x128xf32> -> vector<8x128xf32>
    %c0_35 = arith.constant 0 : index
    %c0_36 = arith.constant 0 : index
    %c0_37 = arith.constant 0 : index
    %90 = vector.load %arg8[%c0_35, %c0_36, %c0_37] : memref<1x1x128xf32, #tpu.memory_space<vmem>>, vector<1x1x128xf32>
    %91 = vector.shape_cast %90 : vector<1x1x128xf32> to vector<1x128xf32>
    %92 = vector.broadcast %91 : vector<1x128xf32> to vector<8x128xf32>
    %93 = arith.addf %89, %92 : vector<8x128xf32>
    %cst_38 = arith.constant 5.000000e-01 : f32
    %94 = vector.broadcast %cst_38 : f32 to vector<8x128xf32>
    %95 = arith.mulf %94, %93 : vector<8x128xf32>
    %cst_39 = arith.constant 0.707106769 : f32
    %96 = vector.broadcast %cst_39 : f32 to vector<8x128xf32>
    %97 = arith.mulf %93, %96 : vector<8x128xf32>
    %98 = math.erf %97 : vector<8x128xf32>
    %cst_40 = arith.constant 1.000000e+00 : f32
    %99 = vector.broadcast %cst_40 : f32 to vector<8x128xf32>
    %100 = arith.addf %99, %98 : vector<8x128xf32>
    %101 = arith.mulf %95, %100 : vector<8x128xf32>
    %102 = arith.truncf %101 : vector<8x128xf32> to vector<8x128xbf16>
    %c0_41 = arith.constant 0 : index
    %c0_42 = arith.constant 0 : index
    %c0_43 = arith.constant 0 : index
    %103 = vector.load %arg9[%c0_41, %c0_42, %c0_43] : memref<1x128x32xbf16, #tpu.memory_space<vmem>>, vector<1x128x32xbf16>
    %104 = vector.shape_cast %103 : vector<1x128x32xbf16> to vector<128x32xbf16>
    %cst_44 = arith.constant dense<0.000000e+00> : vector<8x32xf32>
    %105 = tpu.matmul %102, %104, %cst_44 {dimension_numbers = #tpu.dot_dimension_numbers<[1], [0], [0], [1], [0, 0, 1, 1], [], []>} : vector<8x128xbf16>, vector<128x32xbf16>, vector<8x32xf32> -> vector<8x32xf32>
    %c0_45 = arith.constant 0 : index
    %c0_46 = arith.constant 0 : index
    %c0_47 = arith.constant 0 : index
    %106 = vector.load %arg10[%c0_45, %c0_46, %c0_47] : memref<1x1x32xf32, #tpu.memory_space<vmem>>, vector<1x1x32xf32>
    %107 = vector.shape_cast %106 : vector<1x1x32xf32> to vector<1x32xf32>
    %108 = vector.broadcast %107 : vector<1x32xf32> to vector<8x32xf32>
    %109 = arith.addf %105, %108 : vector<8x32xf32>
    %110 = arith.addf %69, %109 : vector<8x32xf32>
    %c0_48 = arith.constant 0 : index
    %c0_49 = arith.constant 0 : index
    %111 = vector.load %arg12[%c0_48, %c0_49] : memref<8x32xf32, #tpu.memory_space<vmem>>, vector<8x32xf32>
    tpu.vector_store %arg12[%c0_48, %c0_49], %110 {strides = array<i32>} : memref<8x32xf32, #tpu.memory_space<vmem>>, vector<8x32xf32>,
    %c1_i32 = arith.constant 1 : i32
    %112 = arith.cmpi eq, %arg1, %c1_i32 : i32
    %113 = arith.extui %112 : i1 to i32
    %c0_i32_50 = arith.constant 0 : i32
    %114 = arith.cmpi ne, %113, %c0_i32_50 : i32
    scf.if %114 {
      %c0_51 = arith.constant 0 : index
      %c0_52 = arith.constant 0 : index
      %115 = vector.load %arg11[%c0_51, %c0_52] : memref<8x32xf32, #tpu.memory_space<vmem>>, vector<8x32xf32>
      tpu.vector_store %arg11[%c0_51, %c0_52], %110 {strides = array<i32>} : memref<8x32xf32, #tpu.memory_space<vmem>>, vector<8x32xf32>,
    } else {
    }
    return
  }
  func.func @transform_0(%arg0: i32, %arg1: i32) -> (i32, i32) {
    %c0_i32 = arith.constant 0 : i32
    %c0_i32_0 = arith.constant 0 : i32
    return %arg0, %c0_i32 : i32, i32
  }
  func.func @transform_1(%arg0: i32, %arg1: i32) -> (i32, i32, i32) {
    %c0_i32 = arith.constant 0 : i32
    %c0_i32_0 = arith.constant 0 : i32
    %c0_i32_1 = arith.constant 0 : i32
    return %arg1, %c0_i32, %c0_i32_0 : i32, i32, i32
  }
  func.func @transform_2(%arg0: i32, %arg1: i32) -> (i32, i32, i32) {
    %c0_i32 = arith.constant 0 : i32
    %c0_i32_0 = arith.constant 0 : i32
    %c0_i32_1 = arith.constant 0 : i32
    return %arg1, %c0_i32, %c0_i32_0 : i32, i32, i32
  }
  func.func @transform_3(%arg0: i32, %arg1: i32) -> (i32, i32, i32) {
    %c0_i32 = arith.constant 0 : i32
    %c0_i32_0 = arith.constant 0 : i32
    %c0_i32_1 = arith.constant 0 : i32
    return %arg1, %c0_i32, %c0_i32_0 : i32, i32, i32
  }
  func.func @transform_4(%arg0: i32, %arg1: i32) -> (i32, i32, i32) {
    %c0_i32 = arith.constant 0 : i32
    %c0_i32_0 = arith.constant 0 : i32
    %c0_i32_1 = arith.constant 0 : i32
    return %arg1, %c0_i32, %c0_i32_0 : i32, i32, i32
  }
  func.func @transform_5(%arg0: i32, %arg1: i32) -> (i32, i32, i32) {
    %c0_i32 = arith.constant 0 : i32
    %c0_i32_0 = arith.constant 0 : i32
    %c0_i32_1 = arith.constant 0 : i32
    return %arg1, %c0_i32, %c0_i32_0 : i32, i32, i32
  }
  func.func @transform_6(%arg0: i32, %arg1: i32) -> (i32, i32, i32) {
    %c0_i32 = arith.constant 0 : i32
    %c0_i32_0 = arith.constant 0 : i32
    %c0_i32_1 = arith.constant 0 : i32
    return %arg1, %c0_i32, %c0_i32_0 : i32, i32, i32
  }
  func.func @transform_7(%arg0: i32, %arg1: i32) -> (i32, i32, i32) {
    %c0_i32 = arith.constant 0 : i32
    %c0_i32_0 = arith.constant 0 : i32
    %c0_i32_1 = arith.constant 0 : i32
    return %arg1, %c0_i32, %c0_i32_0 : i32, i32, i32
  }
  func.func @transform_8(%arg0: i32, %arg1: i32) -> (i32, i32, i32) {
    %c0_i32 = arith.constant 0 : i32
    %c0_i32_0 = arith.constant 0 : i32
    %c0_i32_1 = arith.constant 0 : i32
    return %arg1, %c0_i32, %c0_i32_0 : i32, i32, i32
  }
  func.func @transform_9(%arg0: i32, %arg1: i32) -> (i32, i32) {
    %c0_i32 = arith.constant 0 : i32
    %c0_i32_0 = arith.constant 0 : i32
    return %arg0, %c0_i32 : i32, i32
  }
}

</mosaic_0001>

<bundles_post_ra>
// kernel: transformer_forward.1
= control target key start
LH: loop header
LB: loop body
LE: loop exit
PB: predicated region body
PF: predicated region fallthrough
CT: control target
= control target key end

     0   :  { %s3432_s0 = inlined_call_operand.vmem [shape: f32[16,32], index: 0, kind: input, shape index: {}]   ;;  %s3433_s1 = inlined_call_operand.vmem [shape: bf16[2,32,96], index: 1, kind: input, shape index: {}]   ;;  %s3434_s2 = inlined_call_operand.vmem [shape: f32[2,1,96], index: 2, kind: input, shape index: {}]   ;;  %s3435_s3 = inlined_call_operand.vmem [shape: bf16[2,32,32], index: 3, kind: input, shape index: {}]   ;;  %s3436_s4 = inlined_call_operand.vmem [shape: f32[2,1,32], index: 4, kind: input, shape index: {}]   ;;  %s3437_s5 = inlined_call_operand.vmem [shape: bf16[2,32,128], index: 5, kind: input, shape index: {}]   ;;  %s3438_s6 = inlined_call_operand.vmem [shape: f32[2,1,128], index: 6, kind: input, shape index: {}]   ;;  %s3439_s7 = inlined_call_operand.vmem [shape: bf16[2,128,32], index: 7, kind: input, shape index: {}]   ;;  %s3440_s8 = inlined_call_operand.vmem [shape: f32[2,1,32], index: 8, kind: input, shape index: {}]   ;;  %s3441_s9 = inlined_call_operand.hbm [shape: f32[16,32], index: 9, kind: output, shape index: {}]  }
   0x1   :  { %3454 = sst [smem:[#allocation16_spill]] %s3432_s0 }
   0x2   :  { %3455 = sst [smem:[#allocation17_spill]] %s3433_s1 }
   0x3   :  { %3456 = sst [smem:[#allocation18_spill]] %s3435_s3 }
   0x4   :  { %3457 = sst [smem:[#allocation19_spill]] %s3441_s9 }
   0x5   :  { %14 = vsyncpa [#allocation4], 0 }
   0x6   :  { %16 = vsyncpa [#allocation4 + $0x1], 0  ;;  %s2948_s30 = smov 0   ;;  %s2950_s10 = smov 0  }
   0x7   :  { %s2952_s11 = smov 0   ;;  %s2954_s12 = smov 0  }
   0x8   :  { %s2956_s13 = smov 0   ;;  %s2958_s14 = smov 0  }
   0x9   :  { %s2960_s15 = smov 0   ;;  %s2962_s16 = smov 0  }
   0xa LB: > { %3458 = sst [smem:[#allocation6_spill]] %s2856_s30  ;;  %s2487_s17 = sadd.s32 4294967295, %s2884_s16   ;;  %s2884_s16 = sphi %s2962_s16, %s22_s16   ;;  %s2880_s15 = sphi %s2960_s15, %s3486_s15   ;;  %s2876_s14 = sphi %s2958_s14, %s3485_s14   ;;  %s2872_s13 = sphi %s2956_s13, %s3484_s13   ;;  %s2868_s12 = sphi %s2954_s12, %s3483_s12   ;;  %s2864_s11 = sphi %s2952_s11, %s3482_s11   ;;  %s2860_s10 = sphi %s2950_s10, %s3488_s10   ;;  %s2856_s30 = sphi %s2948_s30, %s3487_s30  }
   0xb   : > { %3459 = sst [smem:[#allocation7_spill]] %s2864_s11  ;;  %s2488_s18 = sadd.s32 4294967294, %s2884_s16  }
   0xc   : > { %3460 = sst [smem:[#allocation8_spill]] %s2876_s14  ;;  %s31_s19 = sadd.s32 1, %s2876_s14 }
   0xd   : > { %3461 = sst [smem:[#allocation9_spill]] %s2880_s15  ;;  %p32_p0 = scmp.ge.s32.totalorder %s31_s19, 2 }
   0xe   : > { %3462 = sst [smem:[#allocation10_spill]] %s2884_s16  ;;  %s34_s20 = sadd.s32 1, %s2880_s15 }
   0xf   : > { %p285_p1 = scmp.ne.s32.totalorder %s2864_s11, %s2860_s10  ;;  %p286_p2 = scmp.eq.s32.totalorder %s2487_s17, 3 }
  0x10   : > { %s3490_s19 = smov (%p32_p0, %s31_s19), 0  ;;  %s3492_s20 = smov (!%p32_p0, %s34_s20), %s2880_s15 }
  0x11   : > { %3463 = sst [smem:[#allocation11_spill]] %s3490_s19  ;;  %p2997_p3 = por %p286_p2, %p285_p1 }
  0x12   : > { %p291_p4 = scmp.ne.s32.totalorder %s2860_s10, %s2856_s30  ;;  %p36_p5 = scmp.ge.s32.totalorder %s3492_s20, 2 }
  0x13   : > { %s3464_s21 = scalar_select %p2997_p3, 1, 0 }
  0x14   : > { %p292_p6 = scmp.eq.s32.totalorder %s2488_s18, 3  ;;  %p2491_p7 = scmp.ge.s32.totalorder %s2884_s16, 1 }
  0x15   : > { %3465 = sst [smem:[#allocation12_spill]] %s3464_s21  ;;  %p373_p8 = scmp.lt.s32.totalorder %s2884_s16, 5 }
  0x16   : > { %s3494_s20 = smov (%p36_p5, %s3492_s20), 0  ;;  %p3007_p9 = por %p292_p6, %p291_p4 }
  0x17   : > { %3466 = sst [smem:[#allocation13_spill]] %s3494_s20  ;;  %p374_p10 = pnand %p2491_p7, %p373_p8 }
  0x18   : > { %s3467_s22 = scalar_select %p3007_p9, 1, 0 }
  0x19   : > { %s272_s23 = ssub.s32 %s2880_s15, %s3494_s20  ;;  %s275_s24 = sadd.s32 1, %s2864_s11 }
  0x1a   : > { %3468 = sst [smem:[#allocation14_spill]] %s3467_s22  ;;  %p273_p11 = scmp.eq.s32.totalorder %s272_s23, 0 }
  0x1b   : > { %377 = sbr.rel (%p374_p10) target bundleno = 2883 (0xb43), region = 56  ;;  %s3443_s26 = sand.u32 (!%p374_p10), 1, %s2860_s10  }
  0x1c   : > { %s3015_s25 = scalar_select %p273_p11, %s2864_s11, %s275_s24  }
  0x1d   : > { %p440_p12 = scmp.lt.s32.totalorder (!%p374_p10), %s2872_s13, 1  ;;  %s3021_s27 = sshll.u32 (!%p374_p10), %s3443_s26, 3 }
  0x1e   : > { %3469 = sst [smem:[#allocation15_spill]] %s3015_s25  ;;  %p444_p13 = scmp.lt.s32.totalorder (!%p374_p10), %s2868_s12, 1 }
  0x1f   : > { %s3470_s0 = sld [smem:[#allocation16_spill]] (!%p374_p10)  ;;  %s439_s9 = scalar_lea.vmem (!%p374_p10), [#allocation3], %s3021_s27 }
  0x20   : > { %s441_s28 = scalar_select %p440_p12, %s2872_s13, 1 }
  0x21   : > { %s3026_s29 = scalar_select %p444_p13, %s2868_s12, 1 }
  0x22   : > { %s2493_s17 = sshll.u32 %s441_s28, 3  ;;  %s3471_s1 = sld [smem:[#allocation17_spill]] }
  0x23   : > { %s2576_s20 = sshll.u32 %s3026_s29, 4  ;;  %s3472_s3 = sld [smem:[#allocation18_spill]] }
  0x24   : > { %s459_s18 = scalar_lea.vmem %s3436_s4, %s3026_s29  ;;  %s2579_s14 = sshll.u32 %s3026_s29, 6 }
  0x25   : > { %s443_s24 = scalar_lea.vmem %s3470_s0, %s2493_s17  ;;  %s3053_s0 = scalar_lea.vmem %s3437_s5, %s2576_s20 }
  0x26   : > { %s475_s30 = scalar_lea.vmem %s3440_s8, %s3026_s29  ;;  %s3067_s21 = scalar_lea.vmem %s3439_s7, %s2579_s14 }
  0x27   : > { %p2502_p0 = scmp.ne.s32.totalorder %s2868_s12, 0 }
  0x28   : > { %s3035_s15 = scalar_lea.vmem %s3471_s1, %s2576_s20  ;;  %s467_s1 = scalar_lea.vmem %s3438_s6, %s3026_s29 }
  0x29   : > { %s3044_s16 = scalar_lea.vmem %s3472_s3, %s2576_s20  ;;  %480 = sbr.rel (%p2502_p0) target bundleno = 48 (0x30), region = 60 }
  0x2e   : > { %v481_v0 = vld [vmem:[%s443_s24] sm:$0xff]  ;;  %vm482_vm0 = vcmask 261120  }
  0x2f   : > { %483 = vst.msk [vmem:[#allocation2] sm:$0xff] %vm482_vm0, %v481_v0 }
  0x30 PF: > { %vm491_vm1 = vcmask 261120   ;;  %v2886_v3 = vmov 32.0   ;;  %v2581_v15 = vld [vmem:[%s3035_s15 + $0x8] sm:$0xff]  ;;  %v2580_v16 = vld [vmem:[%s3035_s15] sm:$0xff]  ;;  %s3473_s15 = scalar_lea.vmem %s3434_s2, %s3026_s29  ;;  %s2887_s20 = smov 112   ;;  %vm569_vm6 = vcmask 1047556  }
  0x31   : > { %2765 = vrcp.f32 %v2886_v3  ;;  %551 = vmatpush.bf16.msra.mxu0 %v2581_v15  ;;  %v2761_v29 = vld [vmem:[%s3473_s15] ss:$0 sm:$0xff]  ;;  %s2888_s24 = smov 120   ;;  %s2889_s28 = smov 104   ;;  %v2891_v41 = vmov 1983009808  }
  0x32   : > { %s2890_s17 = smov 96   ;;  %v574_v42 = vunpack.c.l.s4 %v2891_v41  ;;  %v2892_v49 = vmov 1934713408   ;;  %s2893_s23 = smov 64   ;;  %vm1230_vm7 = vcmask 1043456   ;;  %vm1226_vm8 = vcmask 64512  }
  0x33   : > { %v598_v50 = vunpack.c.l.s4 %v2892_v49  ;;  %s2895_s19 = smov 24   ;;  %s2896_s26 = smov 16   ;;  %vm2083_vm10 = vcmask 130048   ;;  %vm2085_vm11 = vcmask 195584  }
  0x34   : > { %v3106_v48 = vunpack.c.0.s8 %v574_v42  ;;  %s2897_s14 = smov 8   ;;  %p2571_p1 = scmp.ne.s32.totalorder %s2868_s12, 1 }
  0x35   : > { %552 = vmatpush.bf16.msra.mxu0 %v2580_v16  ;;  %v3115_v62 = vunpack.c.0.s8 %v598_v50 }
  0x36   : > { %v484_v1 = vld [vmem:[#allocation2] sm:$0xff] }
  0x37   : > { %v492_v2 = vsel %vm491_vm1, %v484_v1, 0.0  ;;  %v2766_v4 = vpop.eup %2765 }
  0x38   : > { %493 = vadd.xlane.f32.xlu0 %v492_v2  ;;  %v496_v5 = vmul.f32 32.0, %v2766_v4  ;;  %vm500_vm2 = vweird.f32 %v2766_v4 }
  0x3a   : > { %v497_v6 = vsub.f32 1.0, %v496_v5 }
  0x3c   : > { %v498_v7 = vmul.f32 %v2766_v4, %v497_v6 }
  0x3e   : > { %v499_v8 = vadd.f32 %v2766_v4, %v498_v7 }
  0x40   : > { %v3072_v9 = vsel %vm500_vm2, %v2766_v4, %v499_v8 }
  0xab   : > { %v494_v10 = vpop.xlane.xlu0 %493 }
  0xac   : > { %v502_v11 = vmul.f32 %v3072_v9, %v494_v10 }
  0xae   : > { %v503_v12 = vsub.f32 %v484_v1, %v502_v11 }
  0xb0   : > { %v504_v13 = vmul.f32 %v503_v12, %v503_v12 }
  0xb2   : > { %v505_v14 = vsel %vm491_vm1, %v504_v13, 0.0 }
  0xb3   : > { %506 = vadd.xlane.f32.xlu0 %v505_v14 }
 0x126   : > { %v507_v17 = vpop.xlane.xlu0 %506 }
 0x127   : > { %v508_v18 = vmul.f32 %v507_v17, %v3072_v9 }
 0x129   : > { %v509_v19 = vadd.f32 1e-05, %v508_v18 }
 0x12b   : > { %2767 = vrsqrt.f32 %v509_v19  ;;  %vm516_vm4 = vweird.f32 %v509_v19 }
 0x131   : > { %v2768_v20 = vpop.eup %2767 }
 0x132   : > { %v511_v21 = vmul.f32 %v2768_v20, %v509_v19  ;;  %vm517_vm3 = vweird.f32 %v2768_v20 }
 0x133   : > { %vm518_vm5 = vmor %vm516_vm4, %vm517_vm3 }
 0x134   : > { %v512_v22 = vmul.f32 %v2768_v20, %v511_v21 }
 0x136   : > { %v513_v23 = vmul.f32 0.5, %v512_v22 }
 0x138   : > { %v514_v24 = vsub.f32 1.5, %v513_v23 }
 0x13a   : > { %v515_v25 = vmul.f32 %v2768_v20, %v514_v24 }
 0x13c   : > { %v519_v26 = vsel %vm518_vm5, %v2768_v20, %v515_v25 }
 0x13d   : > { %v520_v27 = vmul.f32 %v519_v26, %v503_v12 }
 0x13f   : > { %v521_v28 = vpack.c.bf16 %v520_v27, %v520_v27 }
 0x141   : > { %2511 = vmatmul.msk.bf16.vlgmr.msra.gmra.mxu0 %vm491_vm1, %v521_v28 }
 0x1be   : > { %v554_v30 = vpop.f32.mrf.mxu0 }
 0x1bf   : > { %v3085_v31 = vadd.f32 %v2761_v29, %v554_v30 }
 0x1c1   : > { %562 = vrot.lane.b32.xlu2 %v3085_v31, %s2887_s20  ;;  %559 = vrot.lane.b32.xlu1 %v3085_v31, %s2888_s24 }
 0x1c6   : > { %v556_v32 = vpop.f32.mrf.mxu0 }
 0x1c9   : > { %565 = vrot.lane.b32.xlu1 %v3085_v31, %s2889_s28 }
 0x21b   : > { %v3097_v35 = vpop.permute.xlu2 %562 }
 0x233   : > { %v3090_v33 = vpop.permute.xlu1 %559 }
 0x234   : > { %v3094_v34 = vpack.i.bf16 %v3085_v31, %v3090_v33 }
 0x236   : > { %2680 = vrot.lane.b32.xlu2 %v3094_v34, %s2890_s17 }
 0x23b   : > { %v3099_v36 = vpop.permute.xlu1 %565 }
 0x23c   : > { %v3103_v37 = vpack.i.bf16 %v3097_v35, %v3099_v36 }
 0x23e   : > { %2685 = vrot.lane.b32.xlu0 %v3103_v37, %s2890_s17 }
 0x290   : > { %v2681_v38 = vpop.permute.xlu2 %2680 }
 0x291   : > { %v2683_v39 = vunpack.i.h.bf16 %v2681_v38  ;;  %v2682_v40 = vunpack.i.l.bf16 %v2681_v38 }
 0x293   : > { %v639_v44 = vrot.slane %v2683_v39, 4  ;;  %v651_v45 = vrot.slane %v2682_v40, 4 }
 0x2b0   : > { %v2686_v43 = vpop.permute.xlu0 %2685 }
 0x2b1   : > { %v2688_v46 = vunpack.i.h.bf16 %v2686_v43  ;;  %v2687_v47 = vunpack.i.l.bf16 %v2686_v43 }
 0x2b3   : > { %v637_v51 = vrot.slane %v2688_v46, 4  ;;  %v640_v52 = vsel %vm569_vm6, %v2688_v46, %v639_v44  ;;  %v649_v53 = vrot.slane %v2687_v47, 4  ;;  %v652_v54 = vsel %vm569_vm6, %v2687_v47, %v651_v45 }
 0x2b4   : > { %v648_v55 = vperm.slane %v640_v52, %v3106_v48  ;;  %v660_v56 = vperm.slane %v652_v54, %v3106_v48 }
 0x2b5   : > { %v638_v57 = vsel %vm569_vm6, %v637_v51, %v2683_v39  ;;  %v650_v58 = vsel %vm569_vm6, %v649_v53, %v2682_v40 }
 0x2b6   : > { %v675_v59 = vrot.slane %v648_v55, 4  ;;  %v656_v60 = vperm.slane %v650_v58, %v3106_v48  ;;  %v673_v61 = vrot.slane %v660_v56, 4  ;;  %v644_v63 = vperm.slane %v638_v57, %v3106_v48 }
 0x2b8   : > { %v661_v0 = vrot.slane %v656_v60, 4  ;;  %v676_v1 = vsel %vm569_vm6, %v660_v56, %v675_v59  ;;  %v674_v2 = vsel %vm569_vm6, %v673_v61, %v648_v55  ;;  %v663_v16 = vrot.slane %v644_v63, 4 }
 0x2b9   : > { %v684_v3 = vperm.slane %v676_v1, %v3115_v62  ;;  %v680_v4 = vperm.slane %v674_v2, %v3115_v62 }
 0x2ba   : > { %v662_v5 = vsel %vm569_vm6, %v661_v0, %v644_v63  ;;  %v664_v21 = vsel %vm569_vm6, %v656_v60, %v663_v16 }
 0x2bb   : > { %v691_v6 = vrot.slane %v684_v3, 4  ;;  %v689_v7 = vrot.slane %v680_v4, 4  ;;  %v668_v8 = vperm.slane %v662_v5, %v3115_v62  ;;  %v775_v12 = vpack.c.bf16 %v684_v3, %v684_v3 }
 0x2bc   : > { %v773_v17 = vpack.c.bf16 %v680_v4, %v680_v4  ;;  %v672_v22 = vperm.slane %v664_v21, %v3115_v62 }
 0x2bd   : > { %v692_v10 = vsel %vm569_vm6, 0.0, %v691_v6  ;;  %v690_v11 = vsel %vm569_vm6, 0.0, %v689_v7  ;;  %v685_v15 = vrot.slane %v668_v8, 4  ;;  %v769_v19 = vpack.c.bf16 %v668_v8, %v668_v8 }
 0x2be   : > { %v776_v13 = vpack.c.bf16 %v692_v10, %v692_v10  ;;  %v774_v14 = vpack.c.bf16 %v690_v11, %v690_v11  ;;  %v687_v23 = vrot.slane %v672_v22, 4  ;;  %v771_v25 = vpack.c.bf16 %v672_v22, %v672_v22 }
 0x2bf   : > { %v686_v18 = vsel %vm569_vm6, 0.0, %v685_v15 }
 0x2c0   : > { %2692 = vxpose.binary.xlu0.c.b16.start.end [1/2] (short) (narrow) %v776_v13, %v775_v12, 16  ;;  %v770_v20 = vpack.c.bf16 %v686_v18, %v686_v18  ;;  %v688_v24 = vsel %vm569_vm6, 0.0, %v687_v23 }
 0x2c1   : > { %2689 = vxpose.binary.xlu1.c.b16.start.end [1/2] (short) (narrow) %v774_v14, %v773_v17, 16  ;;  %v772_v26 = vpack.c.bf16 %v688_v24, %v688_v24 }
 0x2c2   : > { %2695 = vxpose.binary.xlu2.c.b16.start.end [1/2] (short) (narrow) %v770_v20, %v769_v19, 16 }
 0x2d2   : > { %2698 = vxpose.binary.xlu2.c.b16.start.end [1/2] (short) (narrow) %v772_v26, %v771_v25, 16 }
 0x363   : > { %v2696_v27 = vpop.trf.xlu2 }
 0x36b   : > { %v2697_v28 = vpop.trf.xlu2 }
 0x36c   : > { %v2693_v29 = vpop.trf.xlu0 }
 0x36d   : > { %v2690_v30 = vpop.trf.xlu1  ;;  %v964_v39 = vrot.slane %v2693_v29, 4  ;;  %v568_v29 = vrot.slane %v3097_v35, 4 }
 0x36e   : > { %v958_v32 = vrot.slane %v2690_v30, 4 }
 0x370   : > { %v959_v38 = vsel %vm569_vm6, %v958_v32, %v2696_v27  ;;  %v583_v32 = vrot.slane %v3090_v33, 4 }
 0x371   : > { %v963_v40 = vperm.slane %v959_v38, %v3106_v48  ;;  %v581_v38 = vrot.slane %v3099_v36, 4 }
 0x373   : > { %v2699_v41 = vpop.trf.xlu2  ;;  %v972_v44 = vrot.slane %v963_v40, 4 }
 0x374   : > { %v965_v42 = vsel %vm569_vm6, %v964_v39, %v2699_v41  ;;  %v2694_v47 = vpop.trf.xlu0  ;;  %v584_v39 = vsel %vm569_vm6, %v3099_v36, %v583_v32  ;;  %v582_v41 = vsel %vm569_vm6, %v581_v38, %v3090_v33 }
 0x375   : > { %v2691_v43 = vpop.trf.xlu1  ;;  %v969_v45 = vperm.slane %v965_v42, %v3106_v48  ;;  %v992_v52 = vrot.slane %v2694_v47, 4 }
 0x376   : > { %v986_v46 = vrot.slane %v2691_v43, 4  ;;  %v588_v43 = vperm.slane %v582_v41, %v3106_v48 }
 0x377   : > { %v970_v49 = vrot.slane %v969_v45, 4  ;;  %v973_v50 = vsel %vm569_vm6, %v969_v45, %v972_v44 }
 0x378   : > { %v987_v51 = vsel %vm569_vm6, %v986_v46, %v2697_v28  ;;  %v981_v55 = vperm.slane %v973_v50, %v3115_v62  ;;  %v571_v28 = vrot.slane %v3085_v31, 4  ;;  %v593_v47 = vrot.slane %v588_v43, 4 }
 0x379   : > { %v971_v53 = vsel %vm569_vm6, %v970_v49, %v963_v40  ;;  %v991_v54 = vperm.slane %v987_v51, %v3106_v48 }
 0x37a   : > { %v977_v56 = vperm.slane %v971_v53, %v3115_v62  ;;  %v984_v61 = vrot.slane %v981_v55, 4  ;;  %v1034_v4 = vshrl.u32 %v981_v55, 16  ;;  %v572_v30 = vsel %vm569_vm6, %v3097_v35, %v571_v28 }
 0x37b   : > { %v2700_v57 = vpop.trf.xlu2  ;;  %v1000_v59 = vrot.slane %v991_v54, 4  ;;  %v580_v40 = vperm.slane %v572_v30, %v3106_v48 }
 0x37c   : > { %v993_v58 = vsel %vm569_vm6, %v992_v52, %v2700_v57  ;;  %v982_v1 = vrot.slane %v977_v56, 4  ;;  %v985_v7 = vsel %vm569_vm6, 0, %v984_v61  ;;  %v1018_v25 = vshrl.u32 %v977_v56, 16 }
 0x37d   : > { %v997_v60 = vperm.slane %v993_v58, %v3106_v48  ;;  %v1042_v15 = vshrl.u32 %v985_v7, 16  ;;  %v607_v35 = vrot.slane %v580_v40, 4 }
 0x37e   : > { %v983_v10 = vsel %vm569_vm6, 0, %v982_v1 }
 0x37f   : > { %v998_v63 = vrot.slane %v997_v60, 4  ;;  %v1001_v0 = vsel %vm569_vm6, %v997_v60, %v1000_v59  ;;  %v1026_v20 = vshrl.u32 %v983_v10, 16 }
 0x380   : > { %v1009_v2 = vperm.slane %v1001_v0, %v3115_v62 }
 0x381   : > { %v999_v3 = vsel %vm569_vm6, %v998_v63, %v991_v54 }
 0x382   : > { %v1005_v5 = vperm.slane %v999_v3, %v3115_v62  ;;  %v1035_v6 = vshrl.u32 %v1009_v2, 16  ;;  %v1012_v8 = vrot.slane %v1009_v2, 4  ;;  %v1032_v11 = vpack.i.b16 %v1009_v2, %v981_v55 }
 0x384   : > { %v1036_v12 = vpack.i.b16 %v1035_v6, %v1034_v4  ;;  %v1013_v13 = vsel %vm569_vm6, 0, %v1012_v8  ;;  %v1010_v14 = vrot.slane %v1005_v5, 4  ;;  %v1019_v24 = vshrl.u32 %v1005_v5, 16 }
 0x385   : > { %v1043_v16 = vshrl.u32 %v1013_v13, 16  ;;  %v1040_v18 = vpack.i.b16 %v1013_v13, %v985_v7  ;;  %v1016_v26 = vpack.i.b16 %v1005_v5, %v977_v56 }
 0x386   : > { %2701 = vxpose.binary.xlu2.c.b16.start.end [1/2] (short) (narrow) %v1036_v12, %v1032_v11, 16  ;;  %v1011_v17 = vsel %vm569_vm6, 0, %v1010_v14  ;;  %v1020_v27 = vpack.i.b16 %v1019_v24, %v1018_v25 }
 0x387   : > { %v1044_v19 = vpack.i.b16 %v1043_v16, %v1042_v15  ;;  %v1027_v21 = vshrl.u32 %v1011_v17, 16  ;;  %v1024_v22 = vpack.i.b16 %v1011_v17, %v983_v10 }
 0x389   : > { %2707 = vxpose.binary.xlu1.c.b16.start.end [1/2] (short) (narrow) %v1044_v19, %v1040_v18, 16  ;;  %v1028_v23 = vpack.i.b16 %v1027_v21, %v1026_v20 }
 0x38b   : > { %2704 = vxpose.binary.xlu0.c.b16.start.end [1/2] (short) (narrow) %v1028_v23, %v1024_v22, 16 }
 0x399   : > { %2710 = vxpose.binary.xlu1.c.b16.start.end [1/2] (short) (narrow) %v1020_v27, %v1016_v26, 16 }
 0x3ef   : > { %2719 = vrot.lane.b32.xlu2 %v3103_v37, %s2893_s23  ;;  %v570_v37 = vsel %vm569_vm6, %v568_v29, %v3085_v31 }
 0x3f0   : > { %v576_v42 = vperm.slane %v570_v37, %v3106_v48 }
 0x3f2   : > { %v595_v46 = vrot.slane %v576_v42, 4  ;;  %v594_v52 = vsel %vm569_vm6, %v593_v47, %v576_v42 }
 0x3f3   : > { %v600_v54 = vperm.slane %v594_v52, %v3115_v62 }
 0x3f4   : > { %v596_v49 = vsel %vm569_vm6, %v588_v43, %v595_v46 }
 0x3f5   : > { %v604_v50 = vperm.slane %v596_v49, %v3115_v62  ;;  %v617_v59 = vrot.slane %v600_v54, 4  ;;  %v761_v19 = vpack.c.bf16 %v600_v54, %v600_v54 }
 0x3f7   : > { %v619_v55 = vrot.slane %v604_v50, 4  ;;  %v618_v6 = vsel %vm569_vm6, 0.0, %v617_v59  ;;  %v763_v7 = vpack.c.bf16 %v604_v50, %v604_v50 }
 0x3f8   : > { %v762_v14 = vpack.c.bf16 %v618_v6, %v618_v6 }
 0x3f9   : > { %2714 = vrot.lane.b32.xlu0 %v3094_v34, %s2893_s23  ;;  %v592_v34 = vperm.slane %v584_v39, %v3106_v48  ;;  %v620_v61 = vsel %vm569_vm6, 0.0, %v619_v55 }
 0x3fa   : > { %v764_v5 = vpack.c.bf16 %v620_v61, %v620_v61 }
 0x3fb   : > { %v605_v44 = vrot.slane %v592_v34, 4  ;;  %v608_v45 = vsel %vm569_vm6, %v592_v34, %v607_v35 }
 0x3fc   : > { %v616_v36 = vperm.slane %v608_v45, %v3115_v62 }
 0x3fd   : > { %v606_v31 = vsel %vm569_vm6, %v605_v44, %v580_v40 }
 0x3fe   : > { %v612_v33 = vperm.slane %v606_v31, %v3115_v62  ;;  %v623_v51 = vrot.slane %v616_v36, 4  ;;  %v767_v63 = vpack.c.bf16 %v616_v36, %v616_v36 }
 0x400   : > { %v621_v56 = vrot.slane %v612_v33, 4  ;;  %v624_v57 = vsel %vm569_vm6, 0.0, %v623_v51  ;;  %v765_v8 = vpack.c.bf16 %v612_v33, %v612_v33  ;;  %v784_v10 = vrot.slane %v767_v63, 4 }
 0x401   : > { %v768_v58 = vpack.c.bf16 %v624_v57, %v624_v57 }
 0x402   : > { %v622_v60 = vsel %vm569_vm6, 0.0, %v621_v56  ;;  %v777_v17 = vrot.slane %v765_v8, 4  ;;  %v785_v20 = vsel %vm569_vm6, %v784_v10, %v763_v7 }
 0x403   : > { %v766_v2 = vpack.c.bf16 %v622_v60, %v622_v60  ;;  %v804_v3 = vrot.slane %v768_v58, 4  ;;  %v789_v27 = vperm.slane %v785_v20, %v3106_v48 }
 0x404   : > { %v779_v30 = vsel %vm569_vm6, %v777_v17, %v761_v19 }
 0x405   : > { %v798_v13 = vrot.slane %v766_v2, 4  ;;  %v805_v15 = vsel %vm569_vm6, %v804_v3, %v764_v5  ;;  %v783_v41 = vperm.slane %v779_v30, %v3106_v48  ;;  %v790_v42 = vrot.slane %v789_v27, 4 }
 0x406   : > { %v809_v22 = vperm.slane %v805_v15, %v3106_v48 }
 0x407   : > { %v799_v25 = vsel %vm569_vm6, %v798_v13, %v762_v14  ;;  %v791_v36 = vsel %vm569_vm6, %v790_v42, %v783_v41 }
 0x408   : > { %v803_v38 = vperm.slane %v799_v25, %v3106_v48  ;;  %v810_v39 = vrot.slane %v809_v22, 4  ;;  %v795_v51 = vperm.slane %v791_v36, %v3115_v62 }
 0x40a   : > { %v811_v44 = vsel %vm569_vm6, %v810_v39, %v803_v38  ;;  %v796_v59 = vrot.slane %v795_v51, 4  ;;  %v821_v6 = vshrl.u32 %v795_v51, 16 }
 0x40b   : > { %v815_v31 = vperm.slane %v811_v44, %v3115_v62 }
 0x40d   : > { %v816_v54 = vrot.slane %v815_v31, 4  ;;  %v820_v5 = vpack.i.b16 %v815_v31, %v795_v51 }
 0x40f   : > { %v817_v7 = vsel %vm569_vm6, 0, %v816_v54 }
 0x410   : > { %v828_v15 = vshrl.u32 %v817_v7, 16 }
 0x427   : > { %v2702_v11 = vpop.trf.xlu2 }
 0x428   : > { %v1174_v16 = vrot.slane %v2702_v11, 4 }
 0x42f   : > { %v2703_v40 = vpop.trf.xlu2 }
 0x430   : > { %v1194_v34 = vrot.slane %v2703_v40, 4 }
 0x435   : > { %v2708_v53 = vpop.trf.xlu1 }
 0x436   : > { %v1180_v1 = vrot.slane %v2708_v53, 4 }
 0x437   : > { %v2705_v0 = vpop.trf.xlu0 }
 0x438   : > { %v1181_v12 = vsel %vm569_vm6, %v1180_v1, %v2705_v0  ;;  %v822_v0 = vshrl.u32 %v815_v31, 16 }
 0x439   : > { %v1185_v18 = vperm.slane %v1181_v12, %v3106_v48  ;;  %v797_v12 = vsel %vm569_vm6, 0, %v796_v59 }
 0x43a   : > { %v823_v11 = vpack.i.b16 %v822_v0, %v821_v6  ;;  %v826_v14 = vpack.i.b16 %v817_v7, %v797_v12  ;;  %v827_v17 = vshrl.u32 %v797_v12, 16 }
 0x43b   : > { %v1186_v28 = vrot.slane %v1185_v18, 4 }
 0x43c   : > { %v829_v19 = vpack.i.b16 %v828_v15, %v827_v17 }
 0x43d   : > { %v2709_v4 = vpop.trf.xlu1 }
 0x43e   : > { %v1200_v21 = vrot.slane %v2709_v4, 4 }
 0x43f   : > { %v2706_v23 = vpop.trf.xlu0 }
 0x440   : > { %v1201_v32 = vsel %vm569_vm6, %v1200_v21, %v2706_v23 }
 0x441   : > { %v1205_v35 = vperm.slane %v1201_v32, %v3106_v48 }
 0x443   : > { %v1206_v47 = vrot.slane %v1205_v35, 4 }
 0x445   : > { %v2711_v24 = vpop.trf.xlu1 }
 0x446   : > { %v1175_v26 = vsel %vm569_vm6, %v1174_v16, %v2711_v24 }
 0x447   : > { %v1179_v29 = vperm.slane %v1175_v26, %v3106_v48 }
 0x449   : > { %v1187_v37 = vsel %vm569_vm6, %v1186_v28, %v1179_v29  ;;  %v2720_v16 = vpop.permute.xlu2 %2719 }
 0x44a   : > { %v1191_v43 = vperm.slane %v1187_v37, %v3115_v62  ;;  %v2721_v18 = vunpack.i.l.bf16 %v2720_v16  ;;  %v2722_v20 = vunpack.i.h.bf16 %v2720_v16 }
 0x44c   : > { %v1192_v50 = vrot.slane %v1191_v43, 4  ;;  %v1217_v53 = vshrl.u32 %v1191_v43, 16  ;;  %v717_v22 = vrot.slane %v2721_v18, 4  ;;  %v705_v25 = vrot.slane %v2722_v20, 4 }
 0x44d   : > { %v2712_v45 = vpop.trf.xlu1 }
 0x44e   : > { %v1195_v46 = vsel %vm569_vm6, %v1194_v34, %v2712_v45  ;;  %v1193_v57 = vsel %vm569_vm6, 0, %v1192_v50 }
 0x44f   : > { %v1199_v49 = vperm.slane %v1195_v46, %v3106_v48  ;;  %v1223_v2 = vshrl.u32 %v1193_v57, 16 }
 0x451   : > { %v1207_v33 = vsel %vm569_vm6, %v1206_v47, %v1199_v49 }
 0x452   : > { %v1211_v52 = vperm.slane %v1207_v33, %v3115_v62 }
 0x454   : > { %v1216_v55 = vpack.i.b16 %v1211_v52, %v1191_v43  ;;  %v1218_v56 = vshrl.u32 %v1211_v52, 16  ;;  %v1212_v58 = vrot.slane %v1211_v52, 4 }
 0x456   : > { %v1232_v60 = vsel %vm1230_vm7, %v1216_v55, 0  ;;  %v1219_v61 = vpack.i.b16 %v1218_v56, %v1217_v53  ;;  %v1213_v63 = vsel %vm569_vm6, 0, %v1212_v58  ;;  %v485_v55 = vlaneseq }
 0x457   : > { %1241 = vmatpush.bf16.msra.mxu1 %v1232_v60  ;;  %v1222_v1 = vpack.i.b16 %v1213_v63, %v1193_v57  ;;  %v1224_v3 = vshrl.u32 %v1213_v63, 16  ;;  %v2894_v58 = vmov -1e+30  }
 0x458   : > { %v1251_v4 = vsel %vm1230_vm7, %v1219_v61, 0  ;;  %v486_v56 = vshrl.u32 %v485_v55, 7  ;;  %v488_v57 = vand.u32 127, %v485_v55 }
 0x459   : > { %1260 = vmatpush.bf16.msra.mxu2 %v1251_v4  ;;  %v1270_v8 = vsel %vm1230_vm7, %v1222_v1, 0  ;;  %v1225_v10 = vpack.i.b16 %v1224_v3, %v1223_v2 }
 0x45a   : > { %2512 = vmatmul.msk.bf16.vlgmr.msra.gmra.mxu1 %vm1226_vm8, %v820_v5  ;;  %1279 = vmatpush.bf16.msra.mxu3 %v1270_v8  ;;  %vm489_vm9 = vcmp.le.s32.totalorder %v488_v57, %v486_v56 }
 0x45b   : > { %v1289_v13 = vsel %vm1230_vm7, %v1225_v10, 0  ;;  %v490_v59 = vsel %vm489_vm9, 0.0, %v2894_v58 }
 0x45c   : > { %2513 = vmatmul.msk.bf16.vlgmr.msra.gmra.mxu2 %vm1226_vm8, %v823_v11  ;;  %1298 = vmatpush.bf16.msrb.mxu1 %v1289_v13 }
 0x45d   : > { %2514 = vmatmul.msk.bf16.vlgmr.msra.gmra.mxu3 %vm1226_vm8, %v826_v14 }
 0x46a   : > { %2515 = vmatmul.msk.bf16.vlgmr.msrb.gmra.mxu1 %vm1226_vm8, %v829_v19 }
 0x46b   : > { %v2715_v21 = vpop.permute.xlu0 %2714 }
 0x46c   : > { %v2717_v23 = vunpack.i.h.bf16 %v2715_v21  ;;  %v2716_v24 = vunpack.i.l.bf16 %v2715_v21 }
 0x46e   : > { %v707_v26 = vrot.slane %v2717_v23, 4  ;;  %v718_v27 = vsel %vm569_vm6, %v717_v22, %v2716_v24  ;;  %v719_v28 = vrot.slane %v2716_v24, 4  ;;  %v706_v29 = vsel %vm569_vm6, %v705_v25, %v2717_v23 }
 0x46f   : > { %v724_v30 = vperm.slane %v718_v27, %v3106_v48  ;;  %v712_v34 = vperm.slane %v706_v29, %v3106_v48 }
 0x470   : > { %v708_v32 = vsel %vm569_vm6, %v2722_v20, %v707_v26  ;;  %v720_v38 = vsel %vm569_vm6, %v2721_v18, %v719_v28 }
 0x471   : > { %v716_v39 = vperm.slane %v708_v32, %v3106_v48  ;;  %v728_v40 = vperm.slane %v720_v38, %v3106_v48  ;;  %v729_v37 = vrot.slane %v724_v30, 4  ;;  %v731_v36 = vrot.slane %v712_v34, 4 }
 0x473   : > { %v743_v41 = vrot.slane %v716_v39, 4  ;;  %v741_v42 = vrot.slane %v728_v40, 4  ;;  %v730_v35 = vsel %vm569_vm6, %v729_v37, %v712_v34  ;;  %v732_v50 = vsel %vm569_vm6, %v724_v30, %v731_v36 }
 0x474   : > { %v740_v33 = vperm.slane %v732_v50, %v3115_v62  ;;  %v736_v14 = vperm.slane %v730_v35, %v3115_v62 }
 0x475   : > { %v742_v43 = vsel %vm569_vm6, %v741_v42, %v716_v39  ;;  %v744_v44 = vsel %vm569_vm6, %v728_v40, %v743_v41 }
 0x476   : > { %v748_v45 = vperm.slane %v742_v43, %v3115_v62  ;;  %v755_v51 = vrot.slane %v740_v33, 4  ;;  %v1354_v53 = vpack.c.bf16 %v740_v33, %v740_v33  ;;  %v753_v15 = vrot.slane %v736_v14, 4 }
 0x477   : > { %v752_v17 = vperm.slane %v744_v44, %v3115_v62  ;;  %v1352_v18 = vpack.c.bf16 %v736_v14, %v736_v14 }
 0x478   : > { %v757_v46 = vrot.slane %v748_v45, 4  ;;  %v1356_v49 = vpack.c.bf16 %v748_v45, %v748_v45  ;;  %v756_v52 = vsel %vm569_vm6, 0.0, %v755_v51  ;;  %v754_v16 = vsel %vm569_vm6, 0.0, %v753_v15 }
 0x479   : > { %v1355_v54 = vpack.c.bf16 %v756_v52, %v756_v52  ;;  %v1353_v19 = vpack.c.bf16 %v754_v16, %v754_v16  ;;  %v759_v20 = vrot.slane %v752_v17, 4  ;;  %v1358_v22 = vpack.c.bf16 %v752_v17, %v752_v17 }
 0x47a   : > { %v758_v47 = vsel %vm569_vm6, 0.0, %v757_v46 }
 0x47b   : > { %v1357_v31 = vpack.c.bf16 %v758_v47, %v758_v47  ;;  %v760_v21 = vsel %vm569_vm6, 0.0, %v759_v20 }
 0x47c   : > { %v1359_v23 = vpack.c.bf16 %v760_v21, %v760_v21 }
 0x47d   : > { %2723 = vxpose.binary.xlu1.c.b16.start.end [1/2] (short) (narrow) %v1357_v31, %v1356_v49, 16 }
 0x48d   : > { %2732 = vxpose.binary.xlu1.c.b16.start.end [1/2] (short) (narrow) %v1355_v54, %v1354_v53, 16 }
 0x4d7   : > { %v1243_v60 = vpop.f32.mrf.mxu1 }
 0x4d8   : > { %v1244_v61 = vadd.f32 %v1243_v60, %v490_v59 }
 0x4da   : > { %v1304_v63 = vsel %vm1226_vm8, %v1244_v61, -inf }
 0x4db   : > { %1305 = vmax.xlane.f32.xlu2 %v1304_v63 }
 0x4df   : > { %v1245_v0 = vpop.f32.mrf.mxu1  ;;  %v1262_v1 = vpop.f32.mrf.mxu2 }
 0x4e0   : > { %v1263_v2 = vadd.f32 %v1262_v1, %v490_v59  ;;  %v1281_v3 = vpop.f32.mrf.mxu3 }
 0x4e1   : > { %v1282_v7 = vadd.f32 %v1281_v3, %v490_v59 }
 0x4e2   : > { %v1307_v4 = vsel %vm1226_vm8, %v1263_v2, -inf }
 0x4e3   : > { %1308 = vmax.xlane.f32.xlu0 %v1307_v4  ;;  %v1310_v10 = vsel %vm1226_vm8, %v1282_v7, -inf }
 0x4e7   : > { %v1264_v5 = vpop.f32.mrf.mxu2  ;;  %v1300_v6 = vpop.f32.mrf.mxu1 }
 0x4e8   : > { %v1283_v8 = vpop.f32.mrf.mxu3  ;;  %v1301_v12 = vadd.f32 %v1300_v6, %v490_v59 }
 0x4ea   : > { %v1313_v13 = vsel %vm1226_vm8, %v1301_v12, -inf }
 0x4ed   : > { %1311 = vmax.xlane.f32.xlu1 %v1310_v10 }
 0x4ef   : > { %v1302_v11 = vpop.f32.mrf.mxu1 }
 0x4f5   : > { %1314 = vmax.xlane.f32.xlu1 %v1313_v13 }
 0x504   : > { %2726 = vxpose.binary.xlu2.c.b16.start.end [1/2] (short) (narrow) %v1353_v19, %v1352_v18, 16 }
 0x50c   : > { %2729 = vxpose.binary.xlu0.c.b16.start.end [1/2] (short) (narrow) %v1359_v23, %v1358_v22, 16 }
 0x529   : > { %v2724_v24 = vpop.trf.xlu1 }
 0x52a   : > { %v1488_v33 = vrot.slane %v2724_v24, 4 }
 0x531   : > { %v2725_v25 = vpop.trf.xlu1 }
 0x532   : > { %v1516_v56 = vrot.slane %v2725_v25, 4 }
 0x539   : > { %v2733_v26 = vpop.trf.xlu1 }
 0x541   : > { %v2734_v28 = vpop.trf.xlu1 }
 0x54e   : > { %v1306_v34 = vpop.xlane.xlu2 %1305 }
 0x54f   : > { %v1316_v35 = vsub.f32 %v1244_v61, %v1306_v34 }
 0x551   : > { %v1320_v44 = vmul.f32 1.442695, %v1316_v35 }
 0x556   : > { %v1309_v27 = vpop.xlane.xlu0 %1308 }
 0x557   : > { %v1317_v29 = vsub.f32 %v1263_v2, %v1309_v27 }
 0x559   : > { %v1322_v30 = vmul.f32 1.442695, %v1317_v29 }
 0x55b   : > { %2769 = vpow2.f32 %v1322_v30 }
 0x560   : > { %v1312_v32 = vpop.xlane.xlu1 %1311 }
 0x561   : > { %v3240_v38 = vpop.eup %2769  ;;  %v1318_v40 = vsub.f32 %v1282_v7, %v1312_v32 }
 0x562   : > { %v1331_v39 = vsel %vm1226_vm8, %v3240_v38, 0.0 }
 0x563   : > { %1332 = vadd.xlane.f32.xlu1 %v1331_v39  ;;  %v1324_v37 = vmul.f32 1.442695, %v1318_v40 }
 0x565   : > { %2771 = vpow2.f32 %v1324_v37 }
 0x568   : > { %v1315_v41 = vpop.xlane.xlu1 %1314 }
 0x569   : > { %v1319_v42 = vsub.f32 %v1301_v12, %v1315_v41 }
 0x56b   : > { %v1326_v43 = vmul.f32 1.442695, %v1319_v42  ;;  %v3244_v45 = vpop.eup %2771 }
 0x56c   : > { %v1334_v36 = vsel %vm1226_vm8, %v3244_v45, 0.0 }
 0x56d   : > { %2773 = vpow2.f32 %v1326_v43 }
 0x56e   : > { %2775 = vpow2.f32 %v1320_v44 }
 0x573   : > { %v3246_v46 = vpop.eup %2773 }
 0x574   : > { %v1337_v47 = vsel %vm1226_vm8, %v3246_v46, 0.0  ;;  %v3252_v49 = vpop.eup %2775 }
 0x575   : > { %1335 = vadd.xlane.f32.xlu2 %v1334_v36  ;;  %1338 = vadd.xlane.f32.xlu1 %v1337_v47  ;;  %v1328_v31 = vsel %vm1226_vm8, %v3252_v49, 0.0 }
 0x57d   : > { %1329 = vadd.xlane.f32.xlu0 %v1328_v31 }
 0x5a5   : > { %v2727_v50 = vpop.trf.xlu2 }
 0x5a6   : > { %v1489_v51 = vsel %vm569_vm6, %v1488_v33, %v2727_v50 }
 0x5a7   : > { %v1493_v52 = vperm.slane %v1489_v51, %v3106_v48 }
 0x5a9   : > { %v1502_v58 = vrot.slane %v1493_v52, 4 }
 0x5ad   : > { %v2728_v55 = vpop.trf.xlu2 }
 0x5ae   : > { %v1517_v60 = vsel %vm569_vm6, %v1516_v56, %v2728_v55 }
 0x5af   : > { %v1521_v0 = vperm.slane %v1517_v60, %v3106_v48 }
 0x5b1   : > { %v1530_v7 = vrot.slane %v1521_v0, 4 }
 0x5b8   : > { %v2730_v53 = vpop.trf.xlu0 }
 0x5b9   : > { %v1494_v54 = vrot.slane %v2730_v53, 4 }
 0x5bb   : > { %v1495_v57 = vsel %vm569_vm6, %v1494_v54, %v2733_v26 }
 0x5bc   : > { %v1499_v59 = vperm.slane %v1495_v57, %v3106_v48 }
 0x5be   : > { %v1500_v61 = vrot.slane %v1499_v59, 4  ;;  %v1503_v63 = vsel %vm569_vm6, %v1499_v59, %v1502_v58 }
 0x5bf   : > { %v1511_v2 = vperm.slane %v1503_v63, %v3115_v62 }
 0x5c0   : > { %v1501_v1 = vsel %vm569_vm6, %v1500_v61, %v1493_v52  ;;  %v2731_v3 = vpop.trf.xlu0 }
 0x5c1   : > { %v1522_v4 = vrot.slane %v2731_v3, 4  ;;  %v1507_v5 = vperm.slane %v1501_v1, %v3115_v62  ;;  %v1514_v10 = vrot.slane %v1511_v2, 4  ;;  %v1564_v16 = vshrl.u32 %v1511_v2, 16 }
 0x5c3   : > { %v1523_v6 = vsel %vm569_vm6, %v1522_v4, %v2734_v28  ;;  %v1512_v13 = vrot.slane %v1507_v5, 4  ;;  %v1515_v17 = vsel %vm569_vm6, 0, %v1514_v10  ;;  %v1548_v23 = vshrl.u32 %v1507_v5, 16 }
 0x5c4   : > { %v1527_v8 = vperm.slane %v1523_v6, %v3106_v48  ;;  %v1572_v29 = vshrl.u32 %v1515_v17, 16 }
 0x5c5   : > { %v1513_v22 = vsel %vm569_vm6, 0, %v1512_v13 }
 0x5c6   : > { %v1528_v11 = vrot.slane %v1527_v8, 4  ;;  %v1531_v12 = vsel %vm569_vm6, %v1527_v8, %v1530_v7  ;;  %v1556_v40 = vshrl.u32 %v1513_v22, 16 }
 0x5c7   : > { %v1539_v14 = vperm.slane %v1531_v12, %v3115_v62 }
 0x5c8   : > { %v1529_v15 = vsel %vm569_vm6, %v1528_v11, %v1521_v0 }
 0x5c9   : > { %v1535_v18 = vperm.slane %v1529_v15, %v3115_v62  ;;  %v1562_v19 = vpack.i.b16 %v1539_v14, %v1511_v2  ;;  %v1565_v20 = vshrl.u32 %v1539_v14, 16  ;;  %v1542_v21 = vrot.slane %v1539_v14, 4 }
 0x5cb   : > { %v1566_v24 = vpack.i.b16 %v1565_v20, %v1564_v16  ;;  %v1543_v25 = vsel %vm569_vm6, 0, %v1542_v21  ;;  %v1540_v26 = vrot.slane %v1535_v18, 4  ;;  %v1546_v27 = vpack.i.b16 %v1535_v18, %v1507_v5 }
 0x5cc   : > { %v1570_v28 = vpack.i.b16 %v1543_v25, %v1515_v17  ;;  %v1573_v30 = vshrl.u32 %v1543_v25, 16  ;;  %v1549_v32 = vshrl.u32 %v1535_v18, 16 }
 0x5cd   : > { %2741 = vxpose.binary.xlu0.c.b16.start.end [1/2] (short) (narrow) %v1566_v24, %v1562_v19, 16  ;;  %v1541_v39 = vsel %vm569_vm6, 0, %v1540_v26 }
 0x5ce   : > { %v1574_v37 = vpack.i.b16 %v1573_v30, %v1572_v29  ;;  %v1554_v34 = vpack.i.b16 %v1541_v39, %v1513_v22  ;;  %v1557_v41 = vshrl.u32 %v1541_v39, 16  ;;  %v1550_v42 = vpack.i.b16 %v1549_v32, %v1548_v23 }
 0x5d0   : > { %2735 = vxpose.binary.xlu1.c.b16.start.end [1/2] (short) (narrow) %v1574_v37, %v1570_v28, 16  ;;  %v1558_v35 = vpack.i.b16 %v1557_v41, %v1556_v40 }
 0x5d2   : > { %2738 = vxpose.binary.xlu2.c.b16.start.end [1/2] (short) (narrow) %v1558_v35, %v1554_v34, 16 }
 0x5d6   : > { %v1333_v43 = vpop.xlane.xlu1 %1332 }
 0x5d7   : > { %2777 = vrcp.f32 %v1333_v43 }
 0x5dd   : > { %v2778_v44 = vpop.eup %2777 }
 0x5de   : > { %v1345_v36 = vmul.f32 %v2778_v44, %v3240_v38 }
 0x5e0   : > { %v1349_v47 = vpack.c.bf16 %v1345_v36, %v1345_v36 }
 0x5e2   : > { %2744 = vxpose.binary.xlu2.c.b16.start.end [1/2] (short) (narrow) %v1550_v42, %v1546_v27, 16  ;;  %v1779_v31 = vsel %vm1226_vm8, %v1349_v47, 0 }
 0x5e3   : > { %1788 = vmatpush.bf16.xpose.msrb.mxu3 %v1779_v31 }
 0x5e8   : > { %v1336_v50 = vpop.xlane.xlu2 %1335  ;;  %v1339_v33 = vpop.xlane.xlu1 %1338 }
 0x5e9   : > { %2779 = vrcp.f32 %v1336_v50 }
 0x5ea   : > { %2781 = vrcp.f32 %v1339_v33 }
 0x5ef   : > { %v2780_v51 = vpop.eup %2779 }
 0x5f0   : > { %v2782_v52 = vpop.eup %2781  ;;  %v1330_v53 = vpop.xlane.xlu0 %1329  ;;  %v1346_v54 = vmul.f32 %v2780_v51, %v3244_v45 }
 0x5f1   : > { %2783 = vrcp.f32 %v1330_v53  ;;  %v1347_v55 = vmul.f32 %v2782_v52, %v3246_v46 }
 0x5f2   : > { %v1350_v56 = vpack.c.bf16 %v1346_v54, %v1346_v54 }
 0x5f3   : > { %v1351_v57 = vpack.c.bf16 %v1347_v55, %v1347_v55 }
 0x5f4   : > { %v1798_v38 = vsel %vm1226_vm8, %v1350_v56, 0 }
 0x5f5   : > { %1807 = vmatpush.bf16.xpose.msra.mxu1 %v1798_v38  ;;  %v1817_v58 = vsel %vm1226_vm8, %v1351_v57, 0 }
 0x5f7   : > { %v2784_v59 = vpop.eup %2783 }
 0x5f8   : > { %v1344_v60 = vmul.f32 %v2784_v59, %v3252_v49 }
 0x5fa   : > { %v1348_v61 = vpack.c.bf16 %v1344_v60, %v1344_v60 }
 0x5fc   : > { %v1760_v63 = vsel %vm1226_vm8, %v1348_v61, 0 }
 0x5fd   : > { %1826 = vmatpush.bf16.xpose.msrb.mxu1 %v1817_v58  ;;  %1769 = vmatpush.bf16.xpose.msrb.mxu2 %v1760_v63 }
 0x673   : > { %v2739_v0 = vpop.trf.xlu2 }
 0x679   : > { %v2742_v1 = vpop.trf.xlu0 }
 0x67a   : > { %v1704_v4 = vrot.slane %v2742_v1, 4 }
 0x67b   : > { %v2740_v45 = vpop.trf.xlu2 }
 0x67c   : > { %v2736_v2 = vpop.trf.xlu1 }
 0x67d   : > { %v1710_v46 = vrot.slane %v2736_v2, 4 }
 0x67f   : > { %v1711_v3 = vsel %vm569_vm6, %v1710_v46, %v2739_v0 }
 0x680   : > { %v1715_v5 = vperm.slane %v1711_v3, %v3106_v48 }
 0x681   : > { %v2743_v11 = vpop.trf.xlu0 }
 0x682   : > { %v1716_v12 = vrot.slane %v1715_v5, 4  ;;  %v1724_v14 = vrot.slane %v2743_v11, 4 }
 0x683   : > { %v2745_v6 = vpop.trf.xlu2 }
 0x684   : > { %v1705_v7 = vsel %vm569_vm6, %v1704_v4, %v2745_v6  ;;  %v2737_v8 = vpop.trf.xlu1 }
 0x685   : > { %v1709_v49 = vperm.slane %v1705_v7, %v3106_v48  ;;  %v1730_v10 = vrot.slane %v2737_v8, 4 }
 0x687   : > { %v1731_v13 = vsel %vm569_vm6, %v1730_v10, %v2740_v45  ;;  %v1717_v15 = vsel %vm569_vm6, %v1716_v12, %v1709_v49 }
 0x688   : > { %v1735_v16 = vperm.slane %v1731_v13, %v3106_v48  ;;  %v1721_v18 = vperm.slane %v1717_v15, %v3115_v62 }
 0x68a   : > { %v1736_v20 = vrot.slane %v1735_v16, 4  ;;  %v1722_v23 = vrot.slane %v1721_v18, 4  ;;  %v1747_v27 = vshrl.u32 %v1721_v18, 16 }
 0x68b   : > { %v2746_v17 = vpop.trf.xlu2 }
 0x68c   : > { %v1725_v19 = vsel %vm569_vm6, %v1724_v14, %v2746_v17  ;;  %v1723_v30 = vsel %vm569_vm6, 0, %v1722_v23 }
 0x68d   : > { %v1729_v21 = vperm.slane %v1725_v19, %v3106_v48  ;;  %v1753_v37 = vshrl.u32 %v1723_v30, 16 }
 0x68f   : > { %v1737_v22 = vsel %vm569_vm6, %v1736_v20, %v1729_v21 }
 0x690   : > { %v1741_v24 = vperm.slane %v1737_v22, %v3115_v62 }
 0x692   : > { %v1742_v25 = vrot.slane %v1741_v24, 4  ;;  %v1746_v26 = vpack.i.b16 %v1741_v24, %v1721_v18  ;;  %v1748_v28 = vshrl.u32 %v1741_v24, 16 }
 0x694   : > { %2516 = vmatmul.msk.bf16.vlgmr.msrb.gmra.mxu2 %vm1226_vm8, %v1746_v26  ;;  %v1749_v29 = vpack.i.b16 %v1748_v28, %v1747_v27  ;;  %v1743_v32 = vsel %vm569_vm6, 0, %v1742_v25 }
 0x695   : > { %v1752_v39 = vpack.i.b16 %v1743_v32, %v1723_v30  ;;  %v1754_v40 = vshrl.u32 %v1743_v32, 16 }
 0x696   : > { %2517 = vmatmul.msk.bf16.vlgmr.msrb.gmra.mxu3 %vm1226_vm8, %v1749_v29 }
 0x697   : > { %2518 = vmatmul.msk.bf16.vlgmr.msra.gmra.mxu1 %vm1226_vm8, %v1752_v39  ;;  %v1755_v34 = vpack.i.b16 %v1754_v40, %v1753_v37 }
 0x6a7   : > { %2519 = vmatmul.msk.bf16.vlgmr.msrb.gmra.mxu1 %vm1226_vm8, %v1755_v34 }
 0x714   : > { %v1809_v41 = vpop.f32.mrf.mxu1 }
 0x717   : > { %v1771_v42 = vpop.f32.mrf.mxu2 }
 0x718   : > { %v2747_v35 = vpack.i.bf16 %v1771_v42, %v1809_v41 }
 0x719   : > { %v1790_v43 = vpop.f32.mrf.mxu3 }
 0x71a   : > { %2748 = vxpose.xlu0.b32.start.end [1/1] (short) (narrow) %v2747_v35, 8 }
 0x71c   : > { %v1811_v44 = vpop.f32.mrf.mxu1 }
 0x71f   : > { %v1773_v36 = vpop.f32.mrf.mxu2 }
 0x721   : > { %v1792_v47 = vpop.f32.mrf.mxu3 }
 0x724   : > { %v1828_v31 = vpop.f32.mrf.mxu1 }
 0x725   : > { %v2754_v50 = vpack.i.bf16 %v1790_v43, %v1828_v31 }
 0x727   : > { %2755 = vxpose.xlu1.b32.start.end [1/1] (short) (narrow) %v2754_v50, 8 }
 0x72c   : > { %v1830_v33 = vpop.f32.mrf.mxu1 }
 0x7be   : > { %v2749_v51 = vpop.trf.xlu0 }
 0x7bf   : > { %v2753_v52 = vunpack.i.h.bf16 %v2749_v51  ;;  %v2750_v53 = vunpack.i.l.bf16 %v2749_v51 }
 0x7c1   : > { %v1962_v54 = vrot.slane %v2753_v52, 4  ;;  %v1960_v55 = vrot.slane %v2750_v53, 4 }
 0x7c3   : > { %v1961_v56 = vsel %vm569_vm6, %v1960_v55, %v2753_v52  ;;  %v1963_v57 = vsel %vm569_vm6, %v2750_v53, %v1962_v54 }
 0x7c4   : > { %v1967_v60 = vperm.slane %v1961_v56, %v3106_v48  ;;  %v1971_v61 = vperm.slane %v1963_v57, %v3106_v48  ;;  %v2583_v57 = vld [vmem:[%s3044_s16 + $0x8] sm:$0xff] }
 0x7c5   : > { %2117 = vmatpush.bf16.msra.mxu2 %v2583_v57 }
 0x7c6   : > { %v1986_v2 = vrot.slane %v1967_v60, 4  ;;  %v1998_v46 = vrot.slane %v1971_v61, 4 }
 0x7cb   : > { %v2756_v38 = vpop.trf.xlu1 }
 0x7cc   : > { %v2760_v58 = vunpack.i.h.bf16 %v2756_v38  ;;  %v2757_v59 = vunpack.i.l.bf16 %v2756_v38 }
 0x7ce   : > { %v1974_v63 = vrot.slane %v2760_v58, 4  ;;  %v1972_v0 = vrot.slane %v2757_v59, 4 }
 0x7d0   : > { %v1973_v45 = vsel %vm569_vm6, %v1972_v0, %v2760_v58  ;;  %v1975_v1 = vsel %vm569_vm6, %v2757_v59, %v1974_v63 }
 0x7d1   : > { %v1979_v3 = vperm.slane %v1973_v45, %v3106_v48  ;;  %v1983_v4 = vperm.slane %v1975_v1, %v3106_v48  ;;  %v2762_v45 = vld [vmem:[%s459_s18] ss:$0 sm:$0xff] }
 0x7d3   : > { %v1984_v5 = vrot.slane %v1979_v3, 4  ;;  %v1987_v6 = vsel %vm569_vm6, %v1979_v3, %v1986_v2  ;;  %v1996_v7 = vrot.slane %v1983_v4, 4  ;;  %v1999_v8 = vsel %vm569_vm6, %v1983_v4, %v1998_v46  ;;  %v2789_v46 = vld [vmem:[#allocation2] sm:$0xff] }
 0x7d4   : > { %v1995_v49 = vperm.slane %v1987_v6, %v3115_v62  ;;  %v2007_v10 = vperm.slane %v1999_v8, %v3115_v62 }
 0x7d5   : > { %v1985_v11 = vsel %vm569_vm6, %v1984_v5, %v1967_v60  ;;  %v1997_v12 = vsel %vm569_vm6, %v1996_v7, %v1971_v61 }
 0x7d6   : > { %v1991_v13 = vperm.slane %v1985_v11, %v3115_v62  ;;  %v2003_v14 = vperm.slane %v1997_v12, %v3115_v62  ;;  %v2010_v15 = vrot.slane %v1995_v49, 4  ;;  %v2014_v16 = vrot.slane %v2007_v10, 4  ;;  %v2585_v11 = vld [vmem:[%s3053_s0 + $0x8] sm:$0xff]  ;;  %v2584_v12 = vld [vmem:[%s3053_s0] sm:$0xff] }
 0x7d7   : > { %2177 = vmatpush.bf16.msra.mxu3 %v2585_v11 }
 0x7d8   : > { %v2011_v17 = vsel %vm569_vm6, 0.0, %v2010_v15  ;;  %v2008_v18 = vrot.slane %v1991_v13, 4  ;;  %v2012_v19 = vrot.slane %v2003_v14, 4  ;;  %v2015_v20 = vsel %vm569_vm6, 0.0, %v2014_v16 }
 0x7d9   : > { %v2016_v21 = vsel %vm569_vm6, %v2010_v15, %v1991_v13  ;;  %v2021_v22 = vrot.slane %v2011_v17, 4  ;;  %v2027_v23 = vsel %vm569_vm6, %v2014_v16, %v2003_v14  ;;  %v2032_v24 = vrot.slane %v2015_v20, 4 }
 0x7da   : > { %v2009_v25 = vsel %vm569_vm6, 0.0, %v2008_v18  ;;  %v2013_v26 = vsel %vm569_vm6, 0.0, %v2012_v19  ;;  %v2020_v27 = vperm.slane %v2016_v21, %v3106_v48  ;;  %v2031_v28 = vperm.slane %v2027_v23, %v3106_v48 }
 0x7db   : > { %v2022_v29 = vsel %vm569_vm6, %v2021_v22, %v2009_v25  ;;  %v2033_v30 = vsel %vm569_vm6, %v2032_v24, %v2013_v26  ;;  %2178 = vmatpush.bf16.msra.mxu3 %v2584_v12  ;;  %v2592_v25 = vld [vmem:[%s3067_s21 + $0x30] sm:$0xff]  ;;  %v2763_v26 = vld [vmem:[%s467_s1] ss:$0 sm:$0xff] }
 0x7dc   : > { %v2026_v32 = vperm.slane %v2022_v29, %v3106_v48  ;;  %v2037_v39 = vperm.slane %v2033_v30, %v3106_v48  ;;  %v2040_v40 = vrot.slane %v2020_v27, 4  ;;  %v2052_v37 = vrot.slane %v2031_v28, 4 }
 0x7de   : > { %v2041_v34 = vsel %vm569_vm6, %v2026_v32, %v2040_v40  ;;  %v2053_v41 = vsel %vm569_vm6, %v2037_v39, %v2052_v37  ;;  %v2038_v42 = vrot.slane %v2026_v32, 4  ;;  %v2050_v35 = vrot.slane %v2037_v39, 4  ;;  %v2590_v32 = vld [vmem:[%s3067_s21 + $0x20] sm:$0xff] }
 0x7df   : > { %v2049_v43 = vperm.slane %v2041_v34, %v3115_v62  ;;  %v2061_v44 = vperm.slane %v2053_v41, %v3115_v62  ;;  %v2589_v34 = vld [vmem:[%s3067_s21 + $0x18] sm:$0xff] }
 0x7e0   : > { %v2039_v36 = vsel %vm569_vm6, %v2038_v42, %v2020_v27  ;;  %v2051_v47 = vsel %vm569_vm6, %v2050_v35, %v2031_v28  ;;  %v2591_v28 = vld [vmem:[%s3067_s21 + $0x28] sm:$0xff] }
 0x7e1   : > { %v2068_v31 = vrot.slane %v2049_v43, 4  ;;  %v2066_v50 = vrot.slane %v2061_v44, 4  ;;  %v2045_v48 = vperm.slane %v2039_v36, %v3115_v62  ;;  %v2057_v33 = vperm.slane %v2051_v47, %v3115_v62  ;;  %v2582_v62 = vld [vmem:[%s3044_s16] sm:$0xff] }
 0x7e2   : > { %2118 = vmatpush.bf16.msra.mxu2 %v2582_v62 }
 0x7e3   : > { %v2069_v51 = vsel %vm569_vm6, %v2061_v44, %v2068_v31  ;;  %v2067_v52 = vsel %vm569_vm6, %v2066_v50, %v2049_v43  ;;  %v2062_v53 = vrot.slane %v2057_v33, 4  ;;  %v2064_v54 = vrot.slane %v2045_v48, 4  ;;  %v2588_v44 = vld [vmem:[%s3067_s21 + $0x10] sm:$0xff]  ;;  %v2587_v31 = vld [vmem:[%s3067_s21 + $0x8] sm:$0xff] }
 0x7e4   : > { %2079 = vrot.lane.b32.xlu1 %v2069_v51, %s2895_s19  ;;  %2075 = vrot.lane.b32.xlu0 %v2067_v52, %s2896_s26  ;;  %v2586_v51 = vld [vmem:[%s3067_s21] sm:$0xff] }
 0x7e5   : > { %v2065_v55 = vsel %vm569_vm6, %v2057_v33, %v2064_v54  ;;  %v2063_v56 = vsel %vm569_vm6, %v2062_v53, %v2045_v48 }
 0x7e6   : > { %2071 = vrot.lane.b32.xlu2 %v2065_v55, %s2897_s14 }
 0x840   : > { %v2072_v38 = vpop.permute.xlu2 %2071 }
 0x841   : > { %v2082_v58 = vsel %vm1226_vm8, %v2063_v56, %v2072_v38 }
 0x856   : > { %v2080_v59 = vpop.permute.xlu1 %2079  ;;  %v2076_v60 = vpop.permute.xlu0 %2075 }
 0x857   : > { %v2084_v61 = vsel %vm2083_vm10, %v2082_v58, %v2076_v60 }
 0x858   : > { %v2086_v63 = vsel %vm2085_vm11, %v2084_v61, %v2080_v59 }
 0x859   : > { %v2087_v0 = vpack.c.bf16 %v2086_v63, %v2086_v63 }
 0x85b   : > { %2528 = vmatmul.msk.bf16.vlgmr.msra.gmra.mxu2 %vm491_vm1, %v2087_v0 }
 0x8de   : > { %v2120_v1 = vpop.f32.mrf.mxu2 }
 0x8df   : > { %v2121_v2 = vadd.f32 %v2762_v45, %v2120_v1 }
 0x8e1   : > { %v3351_v3 = vadd.f32 %v2789_v46, %v2121_v2 }
 0x8e3   : > { %v2125_v4 = vsel %vm491_vm1, %v3351_v3, 0.0 }
 0x8e4   : > { %2126 = vadd.xlane.f32.xlu1 %v2125_v4 }
 0x8e6   : > { %v2122_v5 = vpop.f32.mrf.mxu2 }
 0x957   : > { %v2127_v6 = vpop.xlane.xlu1 %2126 }
 0x958   : > { %v2128_v7 = vmul.f32 %v2127_v6, %v3072_v9 }
 0x95a   : > { %v2129_v8 = vsub.f32 %v3351_v3, %v2128_v7 }
 0x95c   : > { %v2130_v49 = vmul.f32 %v2129_v8, %v2129_v8 }
 0x95e   : > { %v2131_v10 = vsel %vm491_vm1, %v2130_v49, 0.0 }
 0x95f   : > { %2132 = vadd.xlane.f32.xlu2 %v2131_v10 }
 0x9d2   : > { %v2133_v13 = vpop.xlane.xlu2 %2132 }
 0x9d3   : > { %v2134_v14 = vmul.f32 %v2133_v13, %v3072_v9  ;;  %v2593_v9 = vld [vmem:[%s3067_s21 + $0x38] sm:$0xff] }
 0x9d4   : > { %2297 = vmatpush.bf16.msrb.mxu0 %v2593_v9 }
 0x9d5   : > { %v2135_v15 = vadd.f32 1e-05, %v2134_v14  ;;  %v2764_v14 = vld [vmem:[%s475_s30] ss:$0 sm:$0xff] }
 0x9d7   : > { %2785 = vrsqrt.f32 %v2135_v15  ;;  %vm2142_vm13 = vweird.f32 %v2135_v15 }
 0x9d8   : > { %2298 = vmatpush.bf16.msrb.mxu0 %v2592_v25 }
 0x9dc   : > { %2299 = vmatpush.bf16.msrb.mxu0 %v2591_v28 }
 0x9dd   : > { %v2786_v16 = vpop.eup %2785 }
 0x9de   : > { %v2137_v17 = vmul.f32 %v2786_v16, %v2135_v15  ;;  %vm2143_vm12 = vweird.f32 %v2786_v16 }
 0x9df   : > { %vm2144_vm14 = vmor %vm2142_vm13, %vm2143_vm12 }
 0x9e0   : > { %v2138_v18 = vmul.f32 %v2786_v16, %v2137_v17  ;;  %2300 = vmatpush.bf16.msrb.mxu0 %v2590_v32 }
 0x9e2   : > { %v2139_v19 = vmul.f32 0.5, %v2138_v18 }
 0x9e4   : > { %v2140_v20 = vsub.f32 1.5, %v2139_v19  ;;  %2301 = vmatpush.bf16.msrb.mxu0 %v2589_v34 }
 0x9e6   : > { %v2141_v21 = vmul.f32 %v2786_v16, %v2140_v20 }
 0x9e8   : > { %v2145_v22 = vsel %vm2144_vm14, %v2786_v16, %v2141_v21  ;;  %2302 = vmatpush.bf16.msrb.mxu0 %v2588_v44 }
 0x9e9   : > { %v2146_v23 = vmul.f32 %v2145_v22, %v2129_v8 }
 0x9eb   : > { %v2147_v24 = vpack.c.bf16 %v2146_v23, %v2146_v23 }
 0x9ec   : > { %2303 = vmatpush.bf16.msrb.mxu0 %v2587_v31 }
 0x9ed   : > { %2537 = vmatmul.msk.bf16.vlgmr.msra.gmra.mxu3 %vm491_vm1, %v2147_v24 }
 0x9f0   : > { %2304 = vmatpush.bf16.msrb.mxu0 %v2586_v51 }
 0xa70   : > { %v2180_v27 = vpop.f32.mrf.mxu3 }
 0xa71   : > { %v2181_v29 = vadd.f32 %v2763_v26, %v2180_v27 }
 0xa73   : > { %v2185_v30 = vmul.f32 0.70710677, %v2181_v29  ;;  %v2184_v10 = vmul.f32 0.5, %v2181_v29 }
 0xa75   : > { %v2186_v39 = vmul.f32 %v2185_v30, %v2185_v30 }
 0xa77   : > { %v2187_v40 = vmin.f32 %v2186_v39, 16.0 }
 0xa78   : > { %v2182_v37 = vpop.f32.mrf.mxu3 }
 0xa79   : > { %v2188_v41 = vmul.f32 2.1237322e-06, %v2187_v40  ;;  %v2199_v42 = vmul.f32 3.8918573e-05, %v2187_v40 }
 0xa7b   : > { %v2189_v35 = vadd.f32 0.00028619796, %v2188_v41  ;;  %v2200_v43 = vadd.f32 0.001143296, %v2199_v42 }
 0xa7d   : > { %v2190_v36 = vmul.f32 %v2189_v35, %v2187_v40  ;;  %v2201_v47 = vmul.f32 %v2200_v43, %v2187_v40 }
 0xa7f   : > { %v2202_v50 = vadd.f32 0.014752088, %v2201_v47  ;;  %v2191_v48 = vadd.f32 0.0036580483, %v2190_v36 }
 0xa81   : > { %v2203_v33 = vmul.f32 %v2202_v50, %v2187_v40  ;;  %v2192_v53 = vmul.f32 %v2191_v48, %v2187_v40 }
 0xa83   : > { %v2204_v52 = vadd.f32 0.112945676, %v2203_v33  ;;  %v2193_v56 = vadd.f32 0.05243302, %v2192_v53 }
 0xa85   : > { %v2205_v54 = vmul.f32 %v2204_v52, %v2187_v40  ;;  %v2194_v38 = vmul.f32 %v2193_v56, %v2187_v40 }
 0xa87   : > { %v2206_v55 = vadd.f32 0.4994258, %v2205_v54  ;;  %v2195_v58 = vadd.f32 0.18741608, %v2194_v38 }
 0xa89   : > { %v2207_v57 = vmul.f32 %v2206_v55, %v2187_v40  ;;  %v2196_v60 = vmul.f32 %v2195_v58, %v2187_v40 }
 0xa8b   : > { %v2208_v62 = vadd.f32 1.0, %v2207_v57  ;;  %v2197_v45 = vadd.f32 1.1283791, %v2196_v60 }
 0xa8d   : > { %2787 = vrcp.f32 %v2208_v62  ;;  %v2220_v0 = vand.u32 2147483648, %v2208_v62  ;;  %v2218_v2 = vand.u32 2147483647, %v2208_v62  ;;  %vm2214_vm0 = vweird.f32 %v2208_v62 }
 0xa8e   : > { %v2198_v5 = vmul.f32 %v2197_v45, %v2185_v30 }
 0xa8f   : > { %v2221_v4 = vor.u32 1.1754944e-38, %v2220_v0  ;;  %vm2219_vm3 = vcmp.eq.f32.partialorder %v2218_v2, 8.507059e+37 }
 0xa93   : > { %v2788_v59 = vpop.eup %2787 }
 0xa94   : > { %v2210_v61 = vmul.f32 %v2788_v59, %v2208_v62  ;;  %vm2215_vm15 = vweird.f32 %v2788_v59 }
 0xa95   : > { %vm2216_vm2 = vmor %vm2214_vm0, %vm2215_vm15 }
 0xa96   : > { %v2211_v63 = vsub.f32 1.0, %v2210_v61 }
 0xa98   : > { %v2212_v1 = vmul.f32 %v2788_v59, %v2211_v63 }
 0xa9a   : > { %v2213_v46 = vadd.f32 %v2788_v59, %v2212_v1 }
 0xa9c   : > { %v2217_v6 = vsel %vm2216_vm2, %v2788_v59, %v2213_v46 }
 0xa9d   : > { %v2222_v7 = vsel %vm2219_vm3, %v2221_v4, %v2217_v6 }
 0xa9e   : > { %v2223_v8 = vmul.f32 %v2222_v7, %v2198_v5 }
 0xaa0   : > { %v2538_v49 = vclamps-f32 %v2223_v8, 1.0 }
 0xaa2   : > { %v2226_v11 = vadd.f32 1.0, %v2538_v49 }
 0xaa4   : > { %v2227_v12 = vmul.f32 %v2226_v11, %v2184_v10 }
 0xaa6   : > { %v2228_v13 = vpack.c.bf16 %v2227_v12, %v2227_v12 }
 0xaa8   : > { %2305 = vmatmul.bf16.vlgmr.msrb.gmra.mxu0 %v2228_v13 }
 0xb25   : > { %v2306_v15 = vpop.f32.mrf.mxu0 }
 0xb26   : > { %v2307_v16 = vadd.f32 %v2764_v14, %v2306_v15 }
 0xb28   : > { %v2310_v17 = vadd.f32 %v2307_v16, %v3351_v3 }
 0xb29   : > { %2315 = sbr.rel (%p2571_p1) target bundleno = 2863 (0xb2f), region = 64 }
 0xb2a   : > { %2311 = vst.msk [vmem:[#allocation2] sm:$0xff] %vm491_vm1, %v2310_v17 }
 0xb2d   : > { %v2308_v18 = vpop.f32.mrf.mxu0 }
 0xb2e   : > { %2316 = vst.msk [vmem:[%s439_s9] sm:$0xff] %vm491_vm1, %v2310_v17 }
 0xb2f PF: > { %s2573_s18 = sshll.u32 %s2872_s13, 3  ;;  %s3475_s11 = sld [smem:[#allocation19_spill]] }
 0xb30   : > { %s2330_s24 = sshll.u32 %s439_s9, 4  ;;  %s3477_s12 = sand.u32 1, %s2860_s10   ;;  %s2331_s24 = int_to_ptr.vmem [resolvable:$true] %s2330_s24 }
 0xb31   : > { %s2318_s17 = scalar_lea.sflag [#allocation4], %s3477_s12 }
 0xb35   : > { %s3476_s20 = smov %s3475_s11  ;;  %s2328_s15 = scalar_lea.hbm %s3475_s11, %s2573_s18 }
 0xb36   : > { %s2332_s28 = sshll.u32 %s2328_s15, 4  ;;  %s2810_s14 = scalar_lea.hbm %s3476_s20, 16  ;;  %s2333_s28 = int_to_ptr.hbm [resolvable:$true] %s2332_s28 }
 0xb37   : > { %s2804_s23 = sshra.s32 %s2333_s28, 4  ;;  %s2805_s23 = int_to_ptr.hbm [resolvable:$true] %s2804_s23 }
 0xb38   : > { %s2806_s19 = scalar_lea.hbm %s2805_s23, 8  ;;  %p2811_p6 = scmp.lt.s32.totalorder %s2805_s23, %s3476_s20 }
 0xb39   : > { %p2807_p2 = scmp.ne.s32.totalorder %s2805_s23, %s2806_s19  ;;  %p2812_p7 = scmp.lt.s32.totalorder %s2810_s14, %s2806_s19 }
 0xb3b   : > { %p2808_p4 = pnand %p2807_p2, %p2997_p3  ;;  %p2813_p8 = por %p2812_p7, %p2811_p6 }
 0xb3d   : > { %p2809_p5 = pneg %p2808_p4 }
 0xb3f   : > { %p2814_p10 = pnand %p2813_p8, %p2809_p5 }
 0xb41   : > { %2817 = shalt.err (!%p2814_p10)
}
 0xb42   : > { %2594 = dma.vmem_to_hbm [thread:$0]  (%p2997_p3), %s2331_s24, 128, %s2333_s28, %s2318_s17  }
 0xb43 PF: > { %s3478_s27 = sld [smem:[#allocation10_spill]] }
 0xb44   : > { %s3479_s9 = sld [smem:[#allocation6_spill]] }
 0xb49   : > { %p2600_p11 = scmp.ge.s32.totalorder %s3478_s27, 2 }
 0xb4a   : > { %s2344_s16 = sand.u32 1, %s3479_s9  }
 0xb4b   : > { %p2597_p12 = pnand %p2600_p11, %p3007_p9  ;;  %s2345_s1 = scalar_lea.sflag [#allocation4], %s2344_s16 }
 0xb4d   : > { %p2598_p13 = pneg %p2597_p12 }
 0xb4f   : > { %2851 = dma.done.wait (%p2598_p13), %s2345_s1, 128  }
 0xb50   : > { %2853 = vsyncadd (%p2598_p13), %s2345_s1, 4294967168  ;;  %s22_s16 = sadd.s32 1, %s3478_s27   ;;  %s3481_s21 = sld [smem:[#allocation7_spill]] }
 0xb51   : > { %p19_p0 = scmp.ge.s32.totalorder %s22_s16, 6   ;;  %s3482_s11 = sld [smem:[#allocation15_spill]] }
 0xb52   : > { %s3483_s12 = sld [smem:[#allocation8_spill]]  ;;  %s3487_s30 = smov %s2860_s10 }
 0xb53   : > { %s3484_s13 = sld [smem:[#allocation9_spill]]  ;;  %21 = sbr.rel (!%p19_p0) target bundleno = 10 (0xa), region = 123 }
 0xb54   : > { %s3485_s14 = sld [smem:[#allocation11_spill]] }
 0xb55   : > { %s3486_s15 = sld [smem:[#allocation13_spill]] }
 0xb56   : > { %s3488_s10 = smov %s3481_s21 }
 0xb58   :  { %2351 = vsyncpa [#allocation4], 1 }
 0xb59   :  { %2353 = vsyncpa [#allocation4 + $0x1], 1 }

</bundles_post_ra>
